<compile_context>
chip_gen: v6e
topology: v6e:2x2x1
jax: 0.10.0
libtpu: 0.0.40
codegen_flags: <defaults>
</compile_context>

<pallas_src>
import functools

import jax
import jax.numpy as jnp
from jax.experimental import pallas as pl
from jax.experimental.pallas import tpu as pltpu


# ----------------------------- fused Pallas kernel --------------------------

def _mha_fused_kernel(x_ref, wqkv_ref, bqkv_ref, wproj_ref, bproj_ref, o_ref,
                      *, num_heads, head_dim):
    bt, n, clause = x_ref.shape            # (block_b, seq_len, clause_size)
    emb = o_ref.shape[-1]
    hd = num_heads * head_dim

    # --- qkv projection on the whole (bt*n)-row slab: fills MXU rows. -------
    # Weights were pre-permuted + pre-transposed at pack time, so the packed
    # output is [ q | k | v ], each with (head, dim) lane ordering.
    x2 = x_ref[...].reshape(bt * n, clause)
    qkv = (
        jnp.dot(x2, wqkv_ref[...], preferred_element_type=jnp.float32)
        + bqkv_ref[...]
    )                                        # [bt*n, 3*H*D]

    q = qkv[:, 0 * hd:1 * hd].reshape(bt, n, hd)
    k = qkv[:, 1 * hd:2 * hd].reshape(bt, n, hd)
    v = qkv[:, 2 * hd:3 * hd].reshape(bt, n, hd)

    wproj = wproj_ref[...]                   # [H*D, emb], pre-scaled by 1/sqrt(emb)

    # Accumulate the per-head projection directly (no lane concat of heads).
    acc = jnp.zeros((bt * n, emb), jnp.float32)

    for h in range(num_heads):               # H is tiny -> fully unrolled
        # TODO(synk): switch to lax.fori_loop(..., unroll=True) if head count
        # grows enough to pressure the 64-vreg budget.
        sl = slice(h * head_dim, (h + 1) * head_dim)
        qh, kh, vh = q[..., sl], k[..., sl], v[..., sl]          # (bt, n, d)

        energy = jnp.einsum("bqd,bkd->bqk", qh, kh,
                            preferred_element_type=jnp.float32)  # (bt, n, n)
        m = jnp.max(energy, axis=-1, keepdims=True)
        e = jnp.exp(energy - m)
        denom = jnp.sum(e, axis=-1, keepdims=True)
        # Exact divide (keeps 1e-5 tolerance). The post-softmax 1/sqrt(emb)
        # scale is folded into wproj at pack time.
        att = e / denom
        # TODO(synk): attention dropout (args.dropout) omitted -- eval semantics.

        head_out = jnp.einsum("bqk,bkd->bqd", att, vh,
                              preferred_element_type=jnp.float32)  # (bt, n, d)
        acc = acc + jnp.dot(head_out.reshape(bt * n, head_dim), wproj[sl, :],
                            preferred_element_type=jnp.float32)

    o_ref[...] = (acc + bproj_ref[...]).reshape(bt, n, emb)


# ----------------------------- parameter packing (one-time) -----------------

def pack_params(params, *, num_heads, emb_size, clause_size):
    """Hoisted, one-time repacking of the PyTorch-layout weights.

    PyTorch packs the qkv output columns as (h, d, qkv) interleaved; reorder
    to (qkv, h, d) so q/k/v are contiguous lane slices inside the kernel, and
    pre-transpose everything to [IN, OUT].  The post-softmax 1/sqrt(emb_size)
    scale is folded into W_proj^T (linear, exact up to reassociation).
    """
    hd = num_heads * emb_size
    scale = emb_size ** 0.5

    w_qkv = params["w_qkv"].reshape(num_heads, emb_size, 3, clause_size)
    w_qkv = jnp.transpose(w_qkv, (2, 0, 1, 3)).reshape(3 * hd, clause_size)
    b_qkv = params["b_qkv"].reshape(num_heads, emb_size, 3)
    b_qkv = jnp.transpose(b_qkv, (2, 0, 1)).reshape(1, 3 * hd)

    return {
        "w_qkv_t": jnp.asarray(w_qkv.T),                       # [clause, 3*H*D]
        "b_qkv": jnp.asarray(b_qkv),                           # [1, 3*H*D]
        "w_proj_t_scaled": jnp.asarray(params["w_proj"].T) / scale,  # [H*D, emb]
        "b_proj": params["b_proj"].reshape(1, emb_size),       # [1, emb]
    }


# ----------------------------- module wrapper -------------------------------

def multi_head_attention(x, packed, *, num_heads, emb_size, block_b=8):
    """x: [B, N, clause] batch of sequences; packed: output of pack_params."""
    B, N, clause = x.shape
    assert B % block_b == 0, "batch must be divisible by block_b"
    hd = num_heads * emb_size

    kernel = functools.partial(
        _mha_fused_kernel, num_heads=num_heads, head_dim=emb_size)

    return pl.pallas_call(
        kernel,
        out_shape=jax.ShapeDtypeStruct((B, N, emb_size), jnp.float32),
        grid=(B // block_b,),
        in_specs=[
            pl.BlockSpec((block_b, N, clause), lambda b: (b, 0, 0)),
            pl.BlockSpec((clause, 3 * hd), lambda b: (0, 0)),
            pl.BlockSpec((1, 3 * hd), lambda b: (0, 0)),
            pl.BlockSpec((hd, emb_size), lambda b: (0, 0)),
            pl.BlockSpec((1, emb_size), lambda b: (0, 0)),
        ],
        out_specs=pl.BlockSpec((block_b, N, emb_size), lambda b: (b, 0, 0)),
        compiler_params=pltpu.CompilerParams(
            # batch-block axis is independent -> megacore sharding on v7x
            dimension_semantics=("parallel",),
            # tiny working set; explicit limit keeps us well under v7x's 64 MiB
            vmem_limit_bytes=32 * 1024 * 1024,
        ),
    )(x, packed["w_qkv_t"], packed["b_qkv"],
      packed["w_proj_t_scaled"], packed["b_proj"])


# ----------------------------- pure-JAX reference ---------------------------

def reference(x, params, *, num_heads, emb_size):
    def single(xs):
        qkv = xs @ params["w_qkv"].T + params["b_qkv"]
        n = xs.shape[0]
        qkv = jnp.transpose(qkv.reshape(n, num_heads, emb_size, 3), (3, 1, 0, 2))
        q, k, v = qkv[0], qkv[1], qkv[2]
        energy = jnp.einsum("hqd,hkd->hqk", q, k)
        att = jax.nn.softmax(energy, axis=-1) / (emb_size ** 0.5)
        out = jnp.einsum("hal,hlv->hav", att, v)
        out = jnp.transpose(out, (1, 0, 2)).reshape(n, num_heads * emb_size)
        return out @ params["w_proj"].T + params["b_proj"]
    return jax.vmap(single)(x)


# ----------------------------- params / main --------------------------------

def init_params(key, clause_size, emb_size, num_heads):
    k1, k2, k3, k4 = jax.random.split(key, 4)
    qkv_out = emb_size * 3 * num_heads
    proj_in = emb_size * num_heads
    lim_qkv = 1.0 / (clause_size ** 0.5)
    lim_proj = 1.0 / (proj_in ** 0.5)
    return {
        "w_qkv": jax.random.uniform(k1, (qkv_out, clause_size), jnp.float32,
                                    -lim_qkv, lim_qkv),
        "b_qkv": jax.random.uniform(k2, (qkv_out,), jnp.float32,
                                    -lim_qkv, lim_qkv),
        "w_proj": jax.random.uniform(k3, (emb_size, proj_in), jnp.float32,
                                     -lim_proj, lim_proj),
        "b_proj": jax.random.uniform(k4, (emb_size,), jnp.float32,
                                     -lim_proj, lim_proj),
    }


if __name__ == "__main__":
    # small synthetic config: args.clause_size=32, args.tf_emb_size=16,
    # args.head_num=4, args.dropout=0.0, sequence length N=8, batch B=16
    B, N, CLAUSE, EMB, HEADS = 16, 8, 32, 16, 4

    key = jax.random.PRNGKey(0)
    kx, kp = jax.random.split(key)
    x = jax.random.normal(kx, (B, N, CLAUSE), jnp.float32)
    params = init_params(kp, CLAUSE, EMB, HEADS)

    # one-time weight repacking (parameter-load time, not per forward call)
    packed = pack_params(params, num_heads=HEADS, emb_size=EMB, clause_size=CLAUSE)

    out = multi_head_attention(x, packed, num_heads=HEADS, emb_size=EMB, block_b=8)
    out = jax.block_until_ready(out)

    ref = reference(x, params, num_heads=HEADS, emb_size=EMB)
    assert out.shape == (B, N, EMB)
    assert jnp.allclose(out, ref, atol=1e-5, rtol=1e-5), "mismatch vs reference"

    print("KERNEL_OK")
</pallas_src>

<mosaic_0001>
module attributes {stable_mosaic.version = 11 : i64} {
  func.func @_mha_fused_kernel(%arg0: i32, %arg1: memref<8x8x32xf32, #tpu.memory_space<vmem>>, %arg2: memref<32x192xf32, #tpu.memory_space<vmem>>, %arg3: memref<1x192xf32, #tpu.memory_space<vmem>>, %arg4: memref<64x16xf32, #tpu.memory_space<vmem>>, %arg5: memref<1x16xf32, #tpu.memory_space<vmem>>, %arg6: memref<8x8x16xf32, #tpu.memory_space<vmem>>) attributes {dimension_semantics = [#tpu.dimension_semantics<parallel>], iteration_bounds = array<i64: 2>, scalar_prefetch = 0 : i64, scratch_operands = 0 : i64, tpu.core_type = #tpu.core_type<tc>, window_params = [{transform_indices = @transform_0, window_bounds = array<i64: 8, 8, 32>}, {pipeline_mode = #tpu.pipeline_mode<synchronous>, transform_indices = @transform_1, window_bounds = array<i64: 32, 192>}, {pipeline_mode = #tpu.pipeline_mode<synchronous>, transform_indices = @transform_2, window_bounds = array<i64: 1, 192>}, {pipeline_mode = #tpu.pipeline_mode<synchronous>, transform_indices = @transform_3, window_bounds = array<i64: 64, 16>}, {pipeline_mode = #tpu.pipeline_mode<synchronous>, transform_indices = @transform_4, window_bounds = array<i64: 1, 16>}, {transform_indices = @transform_5, window_bounds = array<i64: 8, 8, 16>}]} {
    %c0 = arith.constant 0 : index
    %c0_0 = arith.constant 0 : index
    %c0_1 = arith.constant 0 : index
    %0 = vector.load %arg1[%c0, %c0_0, %c0_1] : memref<8x8x32xf32, #tpu.memory_space<vmem>>, vector<8x8x32xf32>
    %1 = vector.shape_cast %0 : vector<8x8x32xf32> to vector<64x32xf32>
    %c0_2 = arith.constant 0 : index
    %c0_3 = arith.constant 0 : index
    %2 = vector.load %arg2[%c0_2, %c0_3] : memref<32x192xf32, #tpu.memory_space<vmem>>, vector<32x192xf32>
    %cst = arith.constant dense<0.000000e+00> : vector<64x192xf32>
    %3 = tpu.matmul %1, %2, %cst {dimension_numbers = #tpu.dot_dimension_numbers<[1], [0], [0], [1], [0, 0, 1, 1], [], []>} : vector<64x32xf32>, vector<32x192xf32>, vector<64x192xf32> -> vector<64x192xf32>
    %c0_4 = arith.constant 0 : index
    %c0_5 = arith.constant 0 : index
    %4 = vector.load %arg3[%c0_4, %c0_5] : memref<1x192xf32, #tpu.memory_space<vmem>>, vector<1x192xf32>
    %5 = vector.broadcast %4 : vector<1x192xf32> to vector<64x192xf32>
    %6 = arith.addf %3, %5 : vector<64x192xf32>
    %7 = vector.extract_strided_slice %6 {offsets = [0, 0], sizes = [64, 64], strides = [1, 1]} : vector<64x192xf32> to vector<64x64xf32>
    %8 = vector.shape_cast %7 : vector<64x64xf32> to vector<8x8x64xf32>
    %9 = vector.extract_strided_slice %6 {offsets = [0, 64], sizes = [64, 64], strides = [1, 1]} : vector<64x192xf32> to vector<64x64xf32>
    %10 = vector.shape_cast %9 : vector<64x64xf32> to vector<8x8x64xf32>
    %11 = vector.extract_strided_slice %6 {offsets = [0, 128], sizes = [64, 64], strides = [1, 1]} : vector<64x192xf32> to vector<64x64xf32>
    %12 = vector.shape_cast %11 : vector<64x64xf32> to vector<8x8x64xf32>
    %c0_6 = arith.constant 0 : index
    %c0_7 = arith.constant 0 : index
    %13 = vector.load %arg4[%c0_6, %c0_7] : memref<64x16xf32, #tpu.memory_space<vmem>>, vector<64x16xf32>
    %cst_8 = arith.constant 0.000000e+00 : f32
    %14 = vector.broadcast %cst_8 : f32 to vector<64x16xf32>
    %15 = vector.extract_strided_slice %8 {offsets = [0, 0, 0], sizes = [8, 8, 16], strides = [1, 1, 1]} : vector<8x8x64xf32> to vector<8x8x16xf32>
    %16 = vector.extract_strided_slice %10 {offsets = [0, 0, 0], sizes = [8, 8, 16], strides = [1, 1, 1]} : vector<8x8x64xf32> to vector<8x8x16xf32>
    %17 = vector.extract_strided_slice %12 {offsets = [0, 0, 0], sizes = [8, 8, 16], strides = [1, 1, 1]} : vector<8x8x64xf32> to vector<8x8x16xf32>
    "tpu.trace_start"() <{level = 10 : i32, message = "bqd,bkd->bqk"}> : () -> ()
    %cst_9 = arith.constant dense<0.000000e+00> : vector<8x8x8xf32>
    %18 = tpu.matmul %15, %16, %cst_9 {dimension_numbers = #tpu.dot_dimension_numbers<[2], [2], [1], [1], [0, 0, 0, 1, 1, 1], [0], [0]>} : vector<8x8x16xf32>, vector<8x8x16xf32>, vector<8x8x8xf32> -> vector<8x8x8xf32>
    "tpu.trace_stop"() : () -> ()
    %cst_10 = arith.constant dense<0xFF800000> : vector<8x8xf32>
    %19 = vector.multi_reduction <maximumf>, %18, %cst_10 [2] : vector<8x8x8xf32> to vector<8x8xf32>
    %20 = vector.shape_cast %19 : vector<8x8xf32> to vector<8x8x1xf32>
    %21 = vector.broadcast %20 : vector<8x8x1xf32> to vector<8x8x8xf32>
    %22 = arith.subf %18, %21 : vector<8x8x8xf32>
    %23 = math.exp %22 : vector<8x8x8xf32>
    %cst_11 = arith.constant dense<0.000000e+00> : vector<8x8xf32>
    %24 = vector.multi_reduction <add>, %23, %cst_11 [2] : vector<8x8x8xf32> to vector<8x8xf32>
    %25 = vector.shape_cast %24 : vector<8x8xf32> to vector<8x8x1xf32>
    %26 = vector.broadcast %25 : vector<8x8x1xf32> to vector<8x8x8xf32>
    %27 = arith.divf %23, %26 : vector<8x8x8xf32>
    "tpu.trace_start"() <{level = 10 : i32, message = "bqk,bkd->bqd"}> : () -> ()
    %cst_12 = arith.constant dense<0.000000e+00> : vector<8x8x16xf32>
    %28 = tpu.matmul %27, %17, %cst_12 {dimension_numbers = #tpu.dot_dimension_numbers<[2], [1], [1], [2], [0, 0, 0, 1, 1, 2], [0], [0]>} : vector<8x8x8xf32>, vector<8x8x16xf32>, vector<8x8x16xf32> -> vector<8x8x16xf32>
    "tpu.trace_stop"() : () -> ()
    %29 = vector.shape_cast %28 : vector<8x8x16xf32> to vector<64x16xf32>
    %30 = vector.extract_strided_slice %13 {offsets = [0, 0], sizes = [16, 16], strides = [1, 1]} : vector<64x16xf32> to vector<16x16xf32>
    %cst_13 = arith.constant dense<0.000000e+00> : vector<64x16xf32>
    %31 = tpu.matmul %29, %30, %cst_13 {dimension_numbers = #tpu.dot_dimension_numbers<[1], [0], [0], [1], [0, 0, 1, 1], [], []>} : vector<64x16xf32>, vector<16x16xf32>, vector<64x16xf32> -> vector<64x16xf32>
    %32 = arith.addf %14, %31 : vector<64x16xf32>
    %33 = vector.extract_strided_slice %8 {offsets = [0, 0, 16], sizes = [8, 8, 16], strides = [1, 1, 1]} : vector<8x8x64xf32> to vector<8x8x16xf32>
    %34 = vector.extract_strided_slice %10 {offsets = [0, 0, 16], sizes = [8, 8, 16], strides = [1, 1, 1]} : vector<8x8x64xf32> to vector<8x8x16xf32>
    %35 = vector.extract_strided_slice %12 {offsets = [0, 0, 16], sizes = [8, 8, 16], strides = [1, 1, 1]} : vector<8x8x64xf32> to vector<8x8x16xf32>
    "tpu.trace_start"() <{level = 10 : i32, message = "bqd,bkd->bqk"}> : () -> ()
    %cst_14 = arith.constant dense<0.000000e+00> : vector<8x8x8xf32>
    %36 = tpu.matmul %33, %34, %cst_14 {dimension_numbers = #tpu.dot_dimension_numbers<[2], [2], [1], [1], [0, 0, 0, 1, 1, 1], [0], [0]>} : vector<8x8x16xf32>, vector<8x8x16xf32>, vector<8x8x8xf32> -> vector<8x8x8xf32>
    "tpu.trace_stop"() : () -> ()
    %cst_15 = arith.constant dense<0xFF800000> : vector<8x8xf32>
    %37 = vector.multi_reduction <maximumf>, %36, %cst_15 [2] : vector<8x8x8xf32> to vector<8x8xf32>
    %38 = vector.shape_cast %37 : vector<8x8xf32> to vector<8x8x1xf32>
    %39 = vector.broadcast %38 : vector<8x8x1xf32> to vector<8x8x8xf32>
    %40 = arith.subf %36, %39 : vector<8x8x8xf32>
    %41 = math.exp %40 : vector<8x8x8xf32>
    %cst_16 = arith.constant dense<0.000000e+00> : vector<8x8xf32>
    %42 = vector.multi_reduction <add>, %41, %cst_16 [2] : vector<8x8x8xf32> to vector<8x8xf32>
    %43 = vector.shape_cast %42 : vector<8x8xf32> to vector<8x8x1xf32>
    %44 = vector.broadcast %43 : vector<8x8x1xf32> to vector<8x8x8xf32>
    %45 = arith.divf %41, %44 : vector<8x8x8xf32>
    "tpu.trace_start"() <{level = 10 : i32, message = "bqk,bkd->bqd"}> : () -> ()
    %cst_17 = arith.constant dense<0.000000e+00> : vector<8x8x16xf32>
    %46 = tpu.matmul %45, %35, %cst_17 {dimension_numbers = #tpu.dot_dimension_numbers<[2], [1], [1], [2], [0, 0, 0, 1, 1, 2], [0], [0]>} : vector<8x8x8xf32>, vector<8x8x16xf32>, vector<8x8x16xf32> -> vector<8x8x16xf32>
    "tpu.trace_stop"() : () -> ()
    %47 = vector.shape_cast %46 : vector<8x8x16xf32> to vector<64x16xf32>
    %48 = vector.extract_strided_slice %13 {offsets = [16, 0], sizes = [16, 16], strides = [1, 1]} : vector<64x16xf32> to vector<16x16xf32>
    %cst_18 = arith.constant dense<0.000000e+00> : vector<64x16xf32>
    %49 = tpu.matmul %47, %48, %cst_18 {dimension_numbers = #tpu.dot_dimension_numbers<[1], [0], [0], [1], [0, 0, 1, 1], [], []>} : vector<64x16xf32>, vector<16x16xf32>, vector<64x16xf32> -> vector<64x16xf32>
    %50 = arith.addf %32, %49 : vector<64x16xf32>
    %51 = vector.extract_strided_slice %8 {offsets = [0, 0, 32], sizes = [8, 8, 16], strides = [1, 1, 1]} : vector<8x8x64xf32> to vector<8x8x16xf32>
    %52 = vector.extract_strided_slice %10 {offsets = [0, 0, 32], sizes = [8, 8, 16], strides = [1, 1, 1]} : vector<8x8x64xf32> to vector<8x8x16xf32>
    %53 = vector.extract_strided_slice %12 {offsets = [0, 0, 32], sizes = [8, 8, 16], strides = [1, 1, 1]} : vector<8x8x64xf32> to vector<8x8x16xf32>
    "tpu.trace_start"() <{level = 10 : i32, message = "bqd,bkd->bqk"}> : () -> ()
    %cst_19 = arith.constant dense<0.000000e+00> : vector<8x8x8xf32>
    %54 = tpu.matmul %51, %52, %cst_19 {dimension_numbers = #tpu.dot_dimension_numbers<[2], [2], [1], [1], [0, 0, 0, 1, 1, 1], [0], [0]>} : vector<8x8x16xf32>, vector<8x8x16xf32>, vector<8x8x8xf32> -> vector<8x8x8xf32>
    "tpu.trace_stop"() : () -> ()
    %cst_20 = arith.constant dense<0xFF800000> : vector<8x8xf32>
    %55 = vector.multi_reduction <maximumf>, %54, %cst_20 [2] : vector<8x8x8xf32> to vector<8x8xf32>
    %56 = vector.shape_cast %55 : vector<8x8xf32> to vector<8x8x1xf32>
    %57 = vector.broadcast %56 : vector<8x8x1xf32> to vector<8x8x8xf32>
    %58 = arith.subf %54, %57 : vector<8x8x8xf32>
    %59 = math.exp %58 : vector<8x8x8xf32>
    %cst_21 = arith.constant dense<0.000000e+00> : vector<8x8xf32>
    %60 = vector.multi_reduction <add>, %59, %cst_21 [2] : vector<8x8x8xf32> to vector<8x8xf32>
    %61 = vector.shape_cast %60 : vector<8x8xf32> to vector<8x8x1xf32>
    %62 = vector.broadcast %61 : vector<8x8x1xf32> to vector<8x8x8xf32>
    %63 = arith.divf %59, %62 : vector<8x8x8xf32>
    "tpu.trace_start"() <{level = 10 : i32, message = "bqk,bkd->bqd"}> : () -> ()
    %cst_22 = arith.constant dense<0.000000e+00> : vector<8x8x16xf32>
    %64 = tpu.matmul %63, %53, %cst_22 {dimension_numbers = #tpu.dot_dimension_numbers<[2], [1], [1], [2], [0, 0, 0, 1, 1, 2], [0], [0]>} : vector<8x8x8xf32>, vector<8x8x16xf32>, vector<8x8x16xf32> -> vector<8x8x16xf32>
    "tpu.trace_stop"() : () -> ()
    %65 = vector.shape_cast %64 : vector<8x8x16xf32> to vector<64x16xf32>
    %66 = vector.extract_strided_slice %13 {offsets = [32, 0], sizes = [16, 16], strides = [1, 1]} : vector<64x16xf32> to vector<16x16xf32>
    %cst_23 = arith.constant dense<0.000000e+00> : vector<64x16xf32>
    %67 = tpu.matmul %65, %66, %cst_23 {dimension_numbers = #tpu.dot_dimension_numbers<[1], [0], [0], [1], [0, 0, 1, 1], [], []>} : vector<64x16xf32>, vector<16x16xf32>, vector<64x16xf32> -> vector<64x16xf32>
    %68 = arith.addf %50, %67 : vector<64x16xf32>
    %69 = vector.extract_strided_slice %8 {offsets = [0, 0, 48], sizes = [8, 8, 16], strides = [1, 1, 1]} : vector<8x8x64xf32> to vector<8x8x16xf32>
    %70 = vector.extract_strided_slice %10 {offsets = [0, 0, 48], sizes = [8, 8, 16], strides = [1, 1, 1]} : vector<8x8x64xf32> to vector<8x8x16xf32>
    %71 = vector.extract_strided_slice %12 {offsets = [0, 0, 48], sizes = [8, 8, 16], strides = [1, 1, 1]} : vector<8x8x64xf32> to vector<8x8x16xf32>
    "tpu.trace_start"() <{level = 10 : i32, message = "bqd,bkd->bqk"}> : () -> ()
    %cst_24 = arith.constant dense<0.000000e+00> : vector<8x8x8xf32>
    %72 = tpu.matmul %69, %70, %cst_24 {dimension_numbers = #tpu.dot_dimension_numbers<[2], [2], [1], [1], [0, 0, 0, 1, 1, 1], [0], [0]>} : vector<8x8x16xf32>, vector<8x8x16xf32>, vector<8x8x8xf32> -> vector<8x8x8xf32>
    "tpu.trace_stop"() : () -> ()
    %cst_25 = arith.constant dense<0xFF800000> : vector<8x8xf32>
    %73 = vector.multi_reduction <maximumf>, %72, %cst_25 [2] : vector<8x8x8xf32> to vector<8x8xf32>
    %74 = vector.shape_cast %73 : vector<8x8xf32> to vector<8x8x1xf32>
    %75 = vector.broadcast %74 : vector<8x8x1xf32> to vector<8x8x8xf32>
    %76 = arith.subf %72, %75 : vector<8x8x8xf32>
    %77 = math.exp %76 : vector<8x8x8xf32>
    %cst_26 = arith.constant dense<0.000000e+00> : vector<8x8xf32>
    %78 = vector.multi_reduction <add>, %77, %cst_26 [2] : vector<8x8x8xf32> to vector<8x8xf32>
    %79 = vector.shape_cast %78 : vector<8x8xf32> to vector<8x8x1xf32>
    %80 = vector.broadcast %79 : vector<8x8x1xf32> to vector<8x8x8xf32>
    %81 = arith.divf %77, %80 : vector<8x8x8xf32>
    "tpu.trace_start"() <{level = 10 : i32, message = "bqk,bkd->bqd"}> : () -> ()
    %cst_27 = arith.constant dense<0.000000e+00> : vector<8x8x16xf32>
    %82 = tpu.matmul %81, %71, %cst_27 {dimension_numbers = #tpu.dot_dimension_numbers<[2], [1], [1], [2], [0, 0, 0, 1, 1, 2], [0], [0]>} : vector<8x8x8xf32>, vector<8x8x16xf32>, vector<8x8x16xf32> -> vector<8x8x16xf32>
    "tpu.trace_stop"() : () -> ()
    %83 = vector.shape_cast %82 : vector<8x8x16xf32> to vector<64x16xf32>
    %84 = vector.extract_strided_slice %13 {offsets = [48, 0], sizes = [16, 16], strides = [1, 1]} : vector<64x16xf32> to vector<16x16xf32>
    %cst_28 = arith.constant dense<0.000000e+00> : vector<64x16xf32>
    %85 = tpu.matmul %83, %84, %cst_28 {dimension_numbers = #tpu.dot_dimension_numbers<[1], [0], [0], [1], [0, 0, 1, 1], [], []>} : vector<64x16xf32>, vector<16x16xf32>, vector<64x16xf32> -> vector<64x16xf32>
    %86 = arith.addf %68, %85 : vector<64x16xf32>
    %c0_29 = arith.constant 0 : index
    %c0_30 = arith.constant 0 : index
    %87 = vector.load %arg5[%c0_29, %c0_30] : memref<1x16xf32, #tpu.memory_space<vmem>>, vector<1x16xf32>
    %88 = vector.broadcast %87 : vector<1x16xf32> to vector<64x16xf32>
    %89 = arith.addf %86, %88 : vector<64x16xf32>
    %90 = vector.shape_cast %89 : vector<64x16xf32> to vector<8x8x16xf32>
    %c0_31 = arith.constant 0 : index
    %c0_32 = arith.constant 0 : index
    %c0_33 = arith.constant 0 : index
    %91 = vector.load %arg6[%c0_31, %c0_32, %c0_33] : memref<8x8x16xf32, #tpu.memory_space<vmem>>, vector<8x8x16xf32>
    tpu.vector_store %arg6[%c0_31, %c0_32, %c0_33], %90 {strides = array<i32>} : memref<8x8x16xf32, #tpu.memory_space<vmem>>, vector<8x8x16xf32>,
    return
  }
  func.func @transform_0(%arg0: i32) -> (i32, i32, i32) {
    %c0_i32 = arith.constant 0 : i32
    %c0_i32_0 = arith.constant 0 : i32
    %c0_i32_1 = arith.constant 0 : i32
    return %arg0, %c0_i32, %c0_i32_0 : i32, i32, i32
  }
  func.func @transform_1(%arg0: i32) -> (i32, i32) {
    %c0_i32 = arith.constant 0 : i32
    %c0_i32_0 = arith.constant 0 : i32
    %c0_i32_1 = arith.constant 0 : i32
    return %c0_i32, %c0_i32_0 : i32, i32
  }
  func.func @transform_2(%arg0: i32) -> (i32, i32) {
    %c0_i32 = arith.constant 0 : i32
    %c0_i32_0 = arith.constant 0 : i32
    %c0_i32_1 = arith.constant 0 : i32
    return %c0_i32, %c0_i32_0 : i32, i32
  }
  func.func @transform_3(%arg0: i32) -> (i32, i32) {
    %c0_i32 = arith.constant 0 : i32
    %c0_i32_0 = arith.constant 0 : i32
    %c0_i32_1 = arith.constant 0 : i32
    return %c0_i32, %c0_i32_0 : i32, i32
  }
  func.func @transform_4(%arg0: i32) -> (i32, i32) {
    %c0_i32 = arith.constant 0 : i32
    %c0_i32_0 = arith.constant 0 : i32
    %c0_i32_1 = arith.constant 0 : i32
    return %c0_i32, %c0_i32_0 : i32, i32
  }
  func.func @transform_5(%arg0: i32) -> (i32, i32, i32) {
    %c0_i32 = arith.constant 0 : i32
    %c0_i32_0 = arith.constant 0 : i32
    %c0_i32_1 = arith.constant 0 : i32
    return %arg0, %c0_i32, %c0_i32_0 : i32, i32, i32
  }
}

</mosaic_0001>

<bundles_post_ra>
// kernel: tpu_custom_call.1
= control target key start
LH: loop header
LB: loop body
LE: loop exit
PB: predicated region body
PF: predicated region fallthrough
CT: control target
= control target key end

     0   :  { %10 = vsyncpa [#allocation3], 0  ;;  %s8432_s0 = inlined_call_operand.hbm [shape: f32[16,8,32], index: 0, kind: input, shape index: {}]   ;;  %s8433_s1 = inlined_call_operand.vmem [shape: f32[32,192], index: 1, kind: input, shape index: {}]   ;;  %s8434_s2 = inlined_call_operand.vmem [shape: f32[1,192], index: 2, kind: input, shape index: {}]   ;;  %s8435_s3 = inlined_call_operand.vmem [shape: f32[64,16], index: 3, kind: input, shape index: {}]   ;;  %s8436_s4 = inlined_call_operand.vmem [shape: f32[1,16], index: 4, kind: input, shape index: {}]   ;;  %s8437_s5 = inlined_call_operand.hbm [shape: f32[16,8,16], index: 5, kind: output, shape index: {}]  }
   0x1   :  { %12 = vsyncpa [#allocation3 + $0x1], 0 }
   0x2   :  { %13 = vsyncpa [#allocation4], 0 }
   0x3   :  { %15 = vsyncpa [#allocation4 + $0x1], 0  ;;  %s7350_s18 = smov 0   ;;  %s7352_s19 = smov 0  }
   0x4   :  { %s7354_s20 = smov 0   ;;  %s7356_s21 = smov 0  }
   0x5 LB: > { %s7371_s22 = sadd.s32 4294967295, %s7303_s21   ;;  %s6319_s23 = sadd.s32 4294967294, %s7303_s21   ;;  %s7303_s21 = sphi %s7356_s21, %s8452_s21   ;;  %s7299_s20 = sphi %s7354_s20, %s8451_s20   ;;  %s7295_s19 = sphi %s7352_s19, %s8450_s19   ;;  %s7291_s18 = sphi %s7350_s18, %s8449_s18  }
   0x6   : > { %s7375_s24 = sadd.s32 1, %s7303_s21   ;;  %s28_s25 = sadd.s32 1, %s7299_s20 }
   0x7   : > { %s25_s26 = ssub.s32 %s7303_s21, %s7375_s24  ;;  %p35_p0 = scmp.ne.s32.totalorder %s7299_s20, %s7295_s19 }
   0x8   : > { %p26_p1 = scmp.eq.s32.totalorder %s25_s26, 0  ;;  %p36_p2 = scmp.eq.s32.totalorder %s7303_s21, 0 }
   0x9   : > { %p41_p3 = scmp.ne.s32.totalorder %s7295_s19, %s7291_s18  ;;  %p42_p4 = scmp.eq.s32.totalorder %s7371_s22, 0 }
   0xa   : > { %s7387_s27 = scalar_select %p26_p1, %s7299_s20, %s28_s25  }
   0xb   : > { %p7389_p5 = por %p36_p2, %p35_p0  ;;  %p7393_p6 = por %p42_p4, %p41_p3 }
   0xc   : > { %p149_p7 = scmp.eq.s32.totalorder %s7371_s22, 1  ;;  %p155_p8 = scmp.eq.s32.totalorder %s6319_s23, 1 }
   0xd   : > { %s8441_s29 = scalar_select %p7393_p6, 1, 0 }
   0xe   : > { %p7036_p10 = scmp.lt.s32.totalorder %s7303_s21, 2  ;;  %p7400_p11 = por %p149_p7, %p35_p0 }
   0xf   : > { %p7404_p12 = por %p155_p8, %p41_p3  ;;  %s187_s7 = sand.u32 1, %s7299_s20  }
  0x10   : > { %s8442_s30 = scalar_select %p7400_p11, 1, 0 }
  0x11   : > { %s8443_s6 = scalar_select %p7404_p12, 1, 0 }
  0x12   : > { %s6470_s8 = sshll.u32 %s7303_s21, 10  ;;  %s6322_s9 = sshll.u32 %s187_s7, 6 }
  0x13   : > { %s7413_s12 = scalar_lea.hbm %s8432_s0, %s6470_s8  ;;  %s191_s13 = scalar_lea.vmem [#allocation2], %s6322_s9 }
  0x14   : > { %s198_s14 = sshll.u32 %s191_s13, 4  ;;  %p7417_p13 = pnand %p7036_p10, %p7389_p5  ;;  %s7421_s14 = int_to_ptr.vmem [resolvable:$true] %s198_s14 }
  0x15   : > { %s7423_s16 = scalar_lea.sflag [#allocation3], %s187_s7  ;;  %s7211_s17 = scalar_lea.hbm %s7413_s12, 1024 }
  0x16   : > { %p7212_p0 = scmp.ne.s32.totalorder %s7413_s12, %s7211_s17  ;;  %p7213_p1 = pneg %p7417_p13 }
  0x17   : > { %s7216_s26 = scalar_lea.hbm %s8432_s0, 2048  ;;  %p7217_p4 = scmp.lt.s32.totalorder %s7413_s12, %s8432_s0 }
  0x18   : > { %p7214_p2 = pnand %p7213_p1, %p7212_p0  ;;  %p7218_p5 = scmp.lt.s32.totalorder %s7216_s26, %s7211_s17 }
  0x1a   : > { %p7215_p3 = pneg %p7214_p2  ;;  %p7219_p7 = por %p7218_p5, %p7217_p4 }
  0x1c   : > { %p7220_p8 = pnand %p7219_p7, %p7215_p3 }
  0x1e   : > { %7223 = shalt.err (!%p7220_p8)
}
  0x1f   : > { %s7224_s7 = scalar_lea.vmem %s7421_s14, 1024  ;;  %s7305_s9 = smov [#allocation2]  }
  0x20   : > { %p7225_p10 = scmp.ne.s32.totalorder %s7421_s14, %s7224_s7  ;;  %s7229_s10 = sshll.u32 %s7305_s9, 4  ;;  %s7230_s10 = int_to_ptr.vmem [resolvable:$false] %s7229_s10 }
  0x21   : > { %s7231_s11 = scalar_lea.vmem %s7230_s10, 2048  ;;  %p7232_p2 = scmp.lt.s32.totalorder %s7421_s14, %s7230_s10 }
  0x22   : > { %p7227_p9 = pnand %p7225_p10, %p7213_p1  ;;  %p7233_p12 = scmp.lt.s32.totalorder %s7231_s11, %s7224_s7 }
  0x24   : > { %p7228_p0 = pneg %p7227_p9  ;;  %p7234_p11 = por %p7233_p12, %p7232_p2 }
  0x26   : > { %p7235_p6 = pnand %p7234_p11, %p7228_p0 }
  0x28   : > { %7238 = shalt.err (!%p7235_p6)
}
  0x29   : > { %s7306_s13 = smov 128   ;;  %s7307_s17 = smov 8  }
  0x2a   : > { %7031 = dma.hbm_to_vmem [thread:$0]  (!%p7417_p13), %s7413_s12, 1024, %s7421_s14, %s7423_s16, %s7306_s13, %s7306_s13, %s7307_s17  }
  0x2b   : > { %p6325_p9 = scmp.ge.s32.totalorder %s7303_s21, 1  ;;  %p206_p1 = scmp.lt.s32.totalorder %s7303_s21, 3 }
  0x2d   : > { %p207_p3 = pnand %p6325_p9, %p206_p1 }
  0x2e   : > { %s7447_s23 = sand.u32 (!%p207_p3), 1, %s7295_s19   ;;  %p8445_p6 = scmp.ne.s32.totalorder (!%p207_p3), %s8441_s29, 0 }
  0x2f   : > { %210 = sbr.rel (%p207_p3) target bundleno = 3267 (0xcc3), region = 40  ;;  %s6326_s25 = sshll.u32 (!%p207_p3), %s7447_s23, 6 }
  0x30   : > { %s213_s26 = scalar_lea.sflag (!%p207_p3), [#allocation3], %s7447_s23  ;;  %s7453_s28 = scalar_lea.vmem (!%p207_p3), [#allocation2], %s6326_s25 }
  0x34   : > { %7282 = dma.done.wait (%p8445_p6), %s213_s26, 1024  }
  0x35   : > { %7284 = vsyncadd (%p8445_p6), %s213_s26, 4294966272  ;;  %v7308_v0 = vmov 0.0   ;;  %v260_v1 = vld [vmem:[%s8433_s1 + $0x38] sm:$0xff]  ;;  %v259_v2 = vld [vmem:[%s8433_s1 + $0x30] sm:$0xff]  ;;  %vm273_vm0 = vcmask 261120   ;;  %v263_v17 = vlaneseq  ;;  %vm7309_vm1 = vmmov 0  }
  0x36   : > { %362 = vmatprep.mubr.f32.mxu0 %v7308_v0  ;;  %6645 = vmatprep.subr.mxu1 %v7308_v0  ;;  %v258_v3 = vld [vmem:[%s8433_s1 + $0x28] sm:$0xff]  ;;  %v257_v4 = vld [vmem:[%s8433_s1 + $0x20] sm:$0xff]  ;;  %v256_v5 = vld [vmem:[%s8433_s1 + $0x18] sm:$0xff]  ;;  %vm422_vm2 = vcmask 130048   ;;  %vm1036_vm3 = vcmask 64512   ;;  %s7311_s7 = smov 48  }
  0x37   : > { %322 = vmatprep.subr.mxu0 %v260_v1  ;;  %v255_v6 = vld [vmem:[%s8433_s1 + $0x10] sm:$0xff]  ;;  %v254_v7 = vld [vmem:[%s8433_s1 + $0x8] sm:$0xff]  ;;  %v253_v8 = vld [vmem:[%s8433_s1] sm:$0xff]  ;;  %v264_v18 = vshrl.u32 %v263_v17, 7  ;;  %6647 = vmatprep.mubr.msk.f32.mxu1 %vm7309_vm1, %v7308_v0  ;;  %s7312_s29 = smov 112   ;;  %s7313_s9 = smov 32  }
  0x38   : > { %323 = vmatpush1.msra.mxu0 %v259_v2  ;;  %v245_v9 = vld [vmem:[%s7453_s28] sm:$0xff]  ;;  %v246_v10 = vld [vmem:[%s7453_s28 + $0x8] sm:$0xff]  ;;  %v247_v11 = vld [vmem:[%s7453_s28 + $0x10] sm:$0xff]  ;;  %s7314_s10 = smov 96   ;;  %s7315_s8 = smov 80  }
  0x39   : > { %324 = vmatprep.subr.mxu0 %v258_v3  ;;  %v248_v12 = vld [vmem:[%s7453_s28 + $0x18] sm:$0xff]  ;;  %v249_v13 = vld [vmem:[%s7453_s28 + $0x20] sm:$0xff]  ;;  %v250_v14 = vld [vmem:[%s7453_s28 + $0x28] sm:$0xff]  ;;  %v265_v19 = vsub.s32 0, %v264_v18  ;;  %v269_v25 = vsub.s32 1, %v264_v18  ;;  %s242_s15 = scalar_lea.vmem [#allocation5], %s6326_s25 }
  0x3a   : > { %325 = vmatpush1.msra.mxu0 %v257_v4  ;;  %v251_v15 = vld [vmem:[%s7453_s28 + $0x30] sm:$0xff]  ;;  %v252_v16 = vld [vmem:[%s7453_s28 + $0x38] sm:$0xff]  ;;  %v261_v20 = vld [vmem:[%s8434_s2] sm:$0x3]  ;;  %s7310_s28 = smov 64   ;;  %s6471_s25 = sshll.u32 %s7371_s22, 10 }
  0x3b   : > { %326 = vmatprep.subr.mxu0 %v256_v5  ;;  %v266_v23 = vrot.slane %v261_v20, %v265_v19  ;;  %v7522_v29 = vrot.slane %v261_v20, %v269_v25  ;;  %s6246_s16 = sshll.u32 %s242_s15, 4  ;;  %s6233_s22 = scalar_lea.sflag [#allocation4], %s7447_s23  ;;  %s8387_s16 = int_to_ptr.vmem [resolvable:$true] %s6246_s16 }
  0x3c   : > { %327 = vmatpush1.msra.mxu0 %v255_v6  ;;  %p8446_p12 = scmp.ne.s32.totalorder %s8442_s30, 0 }
  0x3d   : > { %328 = vmatprep.subr.mxu0 %v254_v7 }
  0x3e   : > { %329 = vmatpush1.msra.mxu0 %v253_v8 }
  0x3f   : > { %6328 = vmatmul.mubr.msk.f32.vlgmr.msra.gmra.mxu0 %vm273_vm0, %v245_v9  ;;  %6640 = vmatprep.subr.mxu0 %v7308_v0 }
  0x40   : > { %368 = vmatprep.mubr.f32.mxu0 %v7308_v0 }
  0x43   : > { %6329 = vmatmul.mubr.msk.f32.gmra.mxu0 %vm273_vm0, %v246_v10 }
  0x44   : > { %374 = vmatprep.mubr.f32.mxu0 %v7308_v0 }
  0x47   : > { %6330 = vmatmul.mubr.msk.f32.gmra.mxu0 %vm273_vm0, %v247_v11 }
  0x48   : > { %380 = vmatprep.mubr.f32.mxu0 %v7308_v0 }
  0x4b   : > { %6331 = vmatmul.mubr.msk.f32.gmra.mxu0 %vm273_vm0, %v248_v12 }
  0x4c   : > { %386 = vmatprep.mubr.f32.mxu0 %v7308_v0 }
  0x4f   : > { %6332 = vmatmul.mubr.msk.f32.gmra.mxu0 %vm273_vm0, %v249_v13 }
  0x50   : > { %392 = vmatprep.mubr.f32.mxu0 %v7308_v0 }
  0x53   : > { %6333 = vmatmul.mubr.msk.f32.gmra.mxu0 %vm273_vm0, %v250_v14 }
  0x54   : > { %398 = vmatprep.mubr.f32.mxu0 %v7308_v0 }
  0x57   : > { %6334 = vmatmul.mubr.msk.f32.gmra.mxu0 %vm273_vm0, %v251_v15 }
  0x58   : > { %404 = vmatprep.mubr.f32.mxu0 %v7308_v0 }
  0x5b   : > { %6335 = vmatmul.mubr.msk.f32.gmra.mxu0 %vm273_vm0, %v252_v16 }
  0x5c   : > { %6642 = vmatprep.mubr.msk.f32.mxu0 %vm7309_vm1, %v7308_v0 }
  0xff   : > { %v364_v21 = vpop.f32.mrf.mxu0 }
 0x100   : > { %v7538_v38 = vadd.f32 %v364_v21, %v266_v23 }
 0x101   : > { %v7516_v22 = vpop.f32.mrf.mxu0 }
 0x102   : > { %v7618_v61 = vadd.f32 %v7516_v22, %v7522_v29 }
 0x103   : > { %v370_v24 = vpop.f32.mrf.mxu0 }
 0x104   : > { %v7518_v26 = vadd.f32 %v370_v24, %v266_v23 }
 0x105   : > { %v372_v27 = vpop.f32.mrf.mxu0 }
 0x106   : > { %498 = vrot.lane.b32.xlu0 %v7518_v26, %s7310_s28  ;;  %v7589_v57 = vadd.f32 %v372_v27, %v7522_v29 }
 0x107   : > { %v376_v28 = vpop.f32.mrf.mxu0 }
 0x108   : > { %v7524_v30 = vadd.f32 %v376_v28, %v266_v23 }
 0x109   : > { %v378_v31 = vpop.f32.mrf.mxu0 }
 0x10a   : > { %v7527_v32 = vadd.f32 %v378_v31, %v7522_v29  ;;  %575 = vrot.lane.b32.xlu0 %v7524_v30, %s7310_s28 }
 0x10b   : > { %v382_v33 = vpop.f32.mrf.mxu0 }
 0x10c   : > { %v7531_v34 = vadd.f32 %v382_v33, %v266_v23 }
 0x10d   : > { %v384_v35 = vpop.f32.mrf.mxu0 }
 0x10e   : > { %v7534_v36 = vadd.f32 %v384_v35, %v7522_v29  ;;  %652 = vrot.lane.b32.xlu1 %v7531_v34, %s7310_s28 }
 0x10f   : > { %v388_v37 = vpop.f32.mrf.mxu0 }
 0x110   : > { %v7540_v39 = vadd.f32 %v388_v37, %v266_v23 }
 0x111   : > { %v390_v40 = vpop.f32.mrf.mxu0 }
 0x112   : > { %v7543_v41 = vadd.f32 %v390_v40, %v7522_v29  ;;  %729 = vrot.lane.b32.xlu0 %v7540_v39, %s7310_s28  ;;  %420 = vrot.lane.b32.xlu1 %v7538_v38, %s7310_s28 }
 0x113   : > { %v394_v42 = vpop.f32.mrf.mxu0 }
 0x114   : > { %v7549_v43 = vadd.f32 %v394_v42, %v266_v23 }
 0x115   : > { %v396_v44 = vpop.f32.mrf.mxu0 }
 0x116   : > { %v7552_v45 = vadd.f32 %v396_v44, %v7522_v29  ;;  %806 = vrot.lane.b32.xlu1 %v7549_v43, %s7310_s28 }
 0x117   : > { %v400_v46 = vpop.f32.mrf.mxu0 }
 0x118   : > { %v7556_v47 = vadd.f32 %v400_v46, %v266_v23 }
 0x119   : > { %v402_v48 = vpop.f32.mrf.mxu0 }
 0x11a   : > { %v7559_v49 = vadd.f32 %v402_v48, %v7522_v29  ;;  %883 = vrot.lane.b32.xlu0 %v7556_v47, %s7310_s28 }
 0x11b   : > { %v406_v50 = vpop.f32.mrf.mxu0 }
 0x11c   : > { %v7563_v51 = vadd.f32 %v406_v50, %v266_v23 }
 0x11d   : > { %v7627_v5 = vpop.f32.mrf.mxu0 }
 0x11e   : > { %960 = vrot.lane.b32.xlu1 %v7563_v51, %s7310_s28  ;;  %s7316_s28 = smov 16  }
 0x178   : > { %v499_v52 = vpop.permute.xlu0 %498 }
 0x179   : > { %6646 = vmatpush3.xpose.msk.msra.mxu1 %vm422_vm2, %v499_v52 }
 0x17a   : > { %6650 = vmatprep.subr.mxu1 %v7308_v0 }
 0x17c   : > { %6648 = vmatmul.mubr.msk.f32.vlgmr.msra.gmra.mxu1 %vm422_vm2, %v7518_v26  ;;  %v576_v53 = vpop.permute.xlu0 %575 }
 0x17d   : > { %6651 = vmatpush3.xpose.msk.msra.mxu1 %vm422_vm2, %v576_v53  ;;  %6652 = vmatprep.mubr.msk.f32.mxu1 %vm7309_vm1, %v7308_v0 }
 0x17e   : > { %6655 = vmatprep.subr.mxu1 %v7308_v0 }
 0x180   : > { %v653_v54 = vpop.permute.xlu1 %652  ;;  %6653 = vmatmul.mubr.msk.f32.vlgmr.msra.gmra.mxu1 %vm422_vm2, %v7524_v30 }
 0x181   : > { %6656 = vmatpush3.xpose.msk.msra.mxu1 %vm422_vm2, %v653_v54  ;;  %6657 = vmatprep.mubr.msk.f32.mxu1 %vm7309_vm1, %v7308_v0 }
 0x182   : > { %6660 = vmatprep.subr.mxu1 %v7308_v0 }
 0x184   : > { %6658 = vmatmul.mubr.msk.f32.vlgmr.msra.gmra.mxu1 %vm422_vm2, %v7531_v34  ;;  %v730_v55 = vpop.permute.xlu0 %729  ;;  %v421_v56 = vpop.permute.xlu1 %420 }
 0x185   : > { %6641 = vmatpush3.xpose.msk.msra.mxu0 %vm422_vm2, %v421_v56  ;;  %6661 = vmatpush3.xpose.msk.msra.mxu1 %vm422_vm2, %v730_v55 }
 0x186   : > { %6662 = vmatprep.mubr.msk.f32.mxu1 %vm7309_vm1, %v7308_v0  ;;  %6665 = vmatprep.subr.mxu1 %v7308_v0 }
 0x187   : > { %6685 = vmatprep.subr.mxu0 %v7308_v0 }
 0x188   : > { %6643 = vmatmul.mubr.msk.f32.vlgmr.msra.gmra.mxu0 %vm422_vm2, %v7538_v38  ;;  %6663 = vmatmul.mubr.msk.f32.vlgmr.msra.gmra.mxu1 %vm422_vm2, %v7540_v39  ;;  %v807_v58 = vpop.permute.xlu1 %806 }
 0x189   : > { %6666 = vmatpush3.xpose.msk.msra.mxu1 %vm422_vm2, %v807_v58  ;;  %6686 = vmatpush3.msra.mxu0 %v7589_v57 }
 0x18a   : > { %6667 = vmatprep.mubr.msk.f32.mxu1 %vm7309_vm1, %v7308_v0  ;;  %6670 = vmatprep.subr.mxu1 %v7308_v0 }
 0x18b   : > { %6687 = vmatprep.mubr.msk.f32.mxu0 %vm7309_vm1, %v7308_v0  ;;  %6695 = vmatprep.subr.mxu0 %v7308_v0 }
 0x18c   : > { %v884_v59 = vpop.permute.xlu0 %883  ;;  %6668 = vmatmul.mubr.msk.f32.vlgmr.msra.gmra.mxu1 %vm422_vm2, %v7549_v43 }
 0x18d   : > { %6671 = vmatpush3.xpose.msk.msra.mxu1 %vm422_vm2, %v884_v59  ;;  %6672 = vmatprep.mubr.msk.f32.mxu1 %vm7309_vm1, %v7308_v0 }
 0x18e   : > { %6675 = vmatprep.subr.mxu1 %v7308_v0 }
 0x190   : > { %6673 = vmatmul.mubr.msk.f32.vlgmr.msra.gmra.mxu1 %vm422_vm2, %v7556_v47  ;;  %v961_v60 = vpop.permute.xlu1 %960 }
 0x191   : > { %6676 = vmatpush3.xpose.msk.msra.mxu1 %vm422_vm2, %v961_v60  ;;  %6677 = vmatprep.mubr.msk.f32.mxu1 %vm7309_vm1, %v7308_v0 }
 0x192   : > { %6680 = vmatprep.subr.mxu1 %v7308_v0 }
 0x194   : > { %6678 = vmatmul.mubr.msk.f32.vlgmr.msra.gmra.mxu1 %vm422_vm2, %v7563_v51 }
 0x195   : > { %6681 = vmatpush3.msra.mxu1 %v7618_v61  ;;  %6682 = vmatprep.mubr.msk.f32.mxu1 %vm7309_vm1, %v7308_v0 }
 0x196   : > { %6690 = vmatprep.subr.mxu1 %v7308_v0 }
 0x23c   : > { %v570_v62 = vpop.f32.mrf.mxu1 }
 0x23d   : > { %v1040_v63 = vsel %vm1036_vm3, %v570_v62, -inf }
 0x23e   : > { %v6649_v1 = vpop.f32.mrf.mxu1  ;;  %1041 = vmax.xlane.f32.xlu1 %v1040_v63 }
 0x240   : > { %v647_v2 = vpop.f32.mrf.mxu1 }
 0x241   : > { %v1043_v14 = vsel %vm1036_vm3, %v647_v2, -inf }
 0x242   : > { %v6654_v3 = vpop.f32.mrf.mxu1 }
 0x244   : > { %v724_v4 = vpop.f32.mrf.mxu1 }
 0x245   : > { %v1046_v17 = vsel %vm1036_vm3, %v724_v4, -inf }
 0x246   : > { %v6659_v6 = vpop.f32.mrf.mxu1 }
 0x248   : > { %v493_v7 = vpop.f32.mrf.mxu0  ;;  %v801_v8 = vpop.f32.mrf.mxu1 }
 0x249   : > { %v1049_v9 = vsel %vm1036_vm3, %v801_v8, -inf  ;;  %v1037_v10 = vsel %vm1036_vm3, %v493_v7, -inf }
 0x24a   : > { %v6664_v11 = vpop.f32.mrf.mxu1  ;;  %1050 = vmax.xlane.f32.xlu1 %v1049_v9  ;;  %1038 = vmax.xlane.f32.xlu0 %v1037_v10  ;;  %v6644_v12 = vpop.f32.mrf.mxu0 }
 0x24c   : > { %v878_v13 = vpop.f32.mrf.mxu1 }
 0x24d   : > { %v1052_v21 = vsel %vm1036_vm3, %v878_v13, -inf }
 0x24e   : > { %1044 = vmax.xlane.f32.xlu0 %v1043_v14  ;;  %v6669_v15 = vpop.f32.mrf.mxu1 }
 0x250   : > { %v955_v16 = vpop.f32.mrf.mxu1 }
 0x251   : > { %v1055_v18 = vsel %vm1036_vm3, %v955_v16, -inf }
 0x252   : > { %1047 = vmax.xlane.f32.xlu0 %v1046_v17  ;;  %1056 = vmax.xlane.f32.xlu1 %v1055_v18  ;;  %v6674_v19 = vpop.f32.mrf.mxu1 }
 0x254   : > { %v1032_v20 = vpop.f32.mrf.mxu1 }
 0x255   : > { %v1058_v23 = vsel %vm1036_vm3, %v1032_v20, -inf }
 0x256   : > { %1053 = vmax.xlane.f32.xlu0 %v1052_v21  ;;  %v6679_v22 = vpop.f32.mrf.mxu1 }
 0x25a   : > { %1059 = vmax.xlane.f32.xlu0 %v1058_v23 }
 0x263   : > { %1711 = vrot.lane.b32.xlu1 %v7538_v38, %s7311_s7 }
 0x267   : > { %1709 = vrot.lane.b32.xlu1 %v7538_v38, %s7312_s29 }
 0x26b   : > { %1787 = vrot.lane.b32.xlu1 %v7518_v26, %s7312_s29 }
 0x26f   : > { %1945 = vrot.lane.b32.xlu1 %v7531_v34, %s7311_s7 }
 0x270   : > { %1789 = vrot.lane.b32.xlu0 %v7518_v26, %s7311_s7 }
 0x273   : > { %1943 = vrot.lane.b32.xlu1 %v7531_v34, %s7312_s29 }
 0x274   : > { %1867 = vrot.lane.b32.xlu0 %v7524_v30, %s7311_s7 }
 0x278   : > { %1865 = vrot.lane.b32.xlu0 %v7524_v30, %s7312_s29 }
 0x2c7   : > { %v1042_v24 = vpop.xlane.xlu1 %1041 }
 0x2c8   : > { %v1062_v25 = vsub.f32 %v570_v62, %v1042_v24 }
 0x2ca   : > { %v1071_v27 = vmul.f32 1.442695, %v1062_v25 }
 0x2cc   : > { %7083 = vpow2.f32 %v1071_v27 }
 0x2d3   : > { %v1039_v28 = vpop.xlane.xlu0 %1038  ;;  %v1051_v31 = vpop.xlane.xlu1 %1050 }
 0x2d4   : > { %v1061_v33 = vsub.f32 %v493_v7, %v1039_v28  ;;  %v1065_v37 = vsub.f32 %v801_v8, %v1051_v31 }
 0x2d6   : > { %v1069_v35 = vmul.f32 1.442695, %v1061_v33  ;;  %v1077_v46 = vmul.f32 1.442695, %v1065_v37 }
 0x2d7   : > { %v1045_v40 = vpop.xlane.xlu0 %1044 }
 0x2d8   : > { %7085 = vpow2.f32 %v1069_v35  ;;  %v1063_v42 = vsub.f32 %v647_v2, %v1045_v40 }
 0x2d9   : > { %v7652_v44 = vpop.eup %7083 }
 0x2da   : > { %v1073_v48 = vmul.f32 1.442695, %v1063_v42  ;;  %v1088_v50 = vsel %vm1036_vm3, %v7652_v44, 0.0 }
 0x2db   : > { %v1048_v52 = vpop.xlane.xlu0 %1047  ;;  %1089 = vadd.xlane.f32.xlu0 %v1088_v50  ;;  %v1057_v53 = vpop.xlane.xlu1 %1056 }
 0x2dc   : > { %7087 = vpow2.f32 %v1073_v48  ;;  %v1064_v54 = vsub.f32 %v724_v4, %v1048_v52  ;;  %v1067_v55 = vsub.f32 %v955_v16, %v1057_v53 }
 0x2dd   : > { %7089 = vpow2.f32 %v1077_v46 }
 0x2de   : > { %v1075_v56 = vmul.f32 1.442695, %v1064_v54  ;;  %v1081_v58 = vmul.f32 1.442695, %v1067_v55 }
 0x2df   : > { %v1054_v59 = vpop.xlane.xlu0 %1053  ;;  %v7697_v18 = vpop.permute.xlu1 %1711 }
 0x2e0   : > { %7091 = vpow2.f32 %v1075_v56  ;;  %v1066_v60 = vsub.f32 %v878_v13, %v1054_v59 }
 0x2e1   : > { %7093 = vpow2.f32 %v1081_v58 }
 0x2e2   : > { %v1079_v62 = vmul.f32 1.442695, %v1066_v60 }
 0x2e3   : > { %v1060_v63 = vpop.xlane.xlu0 %1059 }
 0x2e4   : > { %7095 = vpow2.f32 %v1079_v62  ;;  %v1068_v1 = vsub.f32 %v1032_v20, %v1060_v63  ;;  %v7701_v20 = vpop.permute.xlu1 %1709 }
 0x2e5   : > { %v7086_v2 = vpop.eup %7085 }
 0x2e6   : > { %v1083_v3 = vmul.f32 1.442695, %v1068_v1  ;;  %v1085_v6 = vsel %vm1036_vm3, %v7086_v2, 0.0  ;;  %v7741_v1 = vadd.f32 %v7627_v5, %v7522_v29 }
 0x2e7   : > { %1086 = vadd.xlane.f32.xlu1 %v1085_v6  ;;  %v7699_v19 = vpop.permute.xlu0 %1789 }
 0x2e8   : > { %7097 = vpow2.f32 %v1083_v3  ;;  %v7705_v22 = vpop.permute.xlu1 %1787 }
 0x2e9   : > { %v7657_v7 = vpop.eup %7087 }
 0x2ea   : > { %v1091_v4 = vsel %vm1036_vm3, %v7657_v7, 0.0  ;;  %v7661_v8 = vpop.eup %7089 }
 0x2eb   : > { %1092 = vadd.xlane.f32.xlu1 %v1091_v4  ;;  %v1097_v11 = vsel %vm1036_vm3, %v7661_v8, 0.0  ;;  %v7703_v21 = vpop.permute.xlu0 %1867 }
 0x2ec   : > { %v7709_v25 = vpop.permute.xlu1 %1945 }
 0x2ed   : > { %v7663_v9 = vpop.eup %7091 }
 0x2ee   : > { %v1094_v10 = vsel %vm1036_vm3, %v7663_v9, 0.0  ;;  %v7669_v12 = vpop.eup %7093 }
 0x2ef   : > { %1095 = vadd.xlane.f32.xlu0 %v1094_v10  ;;  %1098 = vadd.xlane.f32.xlu1 %v1097_v11  ;;  %v1103_v15 = vsel %vm1036_vm3, %v7669_v12, 0.0  ;;  %v7707_v23 = vpop.permute.xlu0 %1865 }
 0x2f0   : > { %v7711_v27 = vpop.permute.xlu1 %1943 }
 0x2f1   : > { %v7671_v13 = vpop.eup %7095 }
 0x2f2   : > { %v1100_v14 = vsel %vm1036_vm3, %v7671_v13, 0.0 }
 0x2f3   : > { %1101 = vadd.xlane.f32.xlu0 %v1100_v14  ;;  %1104 = vadd.xlane.f32.xlu1 %v1103_v15 }
 0x2f5   : > { %v7677_v16 = vpop.eup %7097 }
 0x2f6   : > { %v1106_v17 = vsel %vm1036_vm3, %v7677_v16, 0.0 }
 0x2f7   : > { %1107 = vadd.xlane.f32.xlu0 %v1106_v17 }
 0x304   : > { %2101 = vrot.lane.b32.xlu1 %v7549_v43, %s7311_s7 }
 0x308   : > { %2099 = vrot.lane.b32.xlu1 %v7549_v43, %s7312_s29 }
 0x30c   : > { %2257 = vrot.lane.b32.xlu1 %v7563_v51, %s7311_s7 }
 0x30d   : > { %2023 = vrot.lane.b32.xlu0 %v7540_v39, %s7311_s7 }
 0x310   : > { %2255 = vrot.lane.b32.xlu1 %v7563_v51, %s7312_s29 }
 0x311   : > { %2021 = vrot.lane.b32.xlu0 %v7540_v39, %s7312_s29 }
 0x315   : > { %2179 = vrot.lane.b32.xlu0 %v7556_v47, %s7311_s7  ;;  %s8385_s7 = scalar_lea.hbm %s8437_s5, %s6471_s25 }
 0x319   : > { %2177 = vrot.lane.b32.xlu0 %v7556_v47, %s7312_s29 }
 0x364   : > { %v1090_v24 = vpop.xlane.xlu0 %1089 }
 0x365   : > { %7099 = vrcp.f32 %v1090_v24 }
 0x370   : > { %v1087_v28 = vpop.xlane.xlu1 %1086 }
 0x371   : > { %7101 = vrcp.f32 %v1087_v28 }
 0x372   : > { %v7100_v31 = vpop.eup %7099 }
 0x373   : > { %v1112_v33 = vmul.f32 %v7100_v31, %v7652_v44 }
 0x374   : > { %v1093_v35 = vpop.xlane.xlu1 %1092 }
 0x375   : > { %7103 = vrcp.f32 %v1093_v35  ;;  %6688 = vmatmul.mubr.msk.f32.vlgmr.msra.gmra.mxu0 %vm1036_vm3, %v1112_v33 }
 0x376   : > { %6696 = vmatpush3.msra.mxu0 %v7534_v36  ;;  %6697 = vmatprep.mubr.msk.f32.mxu0 %vm7309_vm1, %v7308_v0 }
 0x377   : > { %6705 = vmatprep.subr.mxu0 %v7308_v0 }
 0x378   : > { %v1096_v37 = vpop.xlane.xlu0 %1095  ;;  %v1099_v40 = vpop.xlane.xlu1 %1098 }
 0x379   : > { %7105 = vrcp.f32 %v1096_v37 }
 0x37a   : > { %7107 = vrcp.f32 %v1099_v40 }
 0x37c   : > { %v1102_v42 = vpop.xlane.xlu0 %1101  ;;  %v1105_v46 = vpop.xlane.xlu1 %1104 }
 0x37d   : > { %7109 = vrcp.f32 %v1102_v42 }
 0x37e   : > { %v7102_v48 = vpop.eup %7101  ;;  %7111 = vrcp.f32 %v1105_v46 }
 0x37f   : > { %v1110_v44 = vmul.f32 %v7102_v48, %v7086_v2 }
 0x380   : > { %v1108_v50 = vpop.xlane.xlu0 %1107  ;;  %v2102_v6 = vpop.permute.xlu1 %2101 }
 0x381   : > { %7113 = vrcp.f32 %v1108_v50  ;;  %6683 = vmatmul.mubr.msk.f32.vlgmr.msra.gmra.mxu1 %vm1036_vm3, %v1110_v44 }
 0x382   : > { %v7104_v52 = vpop.eup %7103  ;;  %6691 = vmatpush3.msra.mxu1 %v7527_v32  ;;  %6692 = vmatprep.mubr.msk.f32.mxu1 %vm7309_vm1, %v7308_v0 }
 0x383   : > { %6700 = vmatprep.subr.mxu1 %v7308_v0  ;;  %v1114_v53 = vmul.f32 %v7104_v52, %v7657_v7 }
 0x384   : > { %v2024_v62 = vpop.permute.xlu0 %2023  ;;  %v2100_v7 = vpop.permute.xlu1 %2099 }
 0x385   : > { %6693 = vmatmul.mubr.msk.f32.vlgmr.msra.gmra.mxu1 %vm1036_vm3, %v1114_v53 }
 0x386   : > { %v7106_v54 = vpop.eup %7105  ;;  %6701 = vmatpush3.msra.mxu1 %v7543_v41  ;;  %6702 = vmatprep.mubr.msk.f32.mxu1 %vm7309_vm1, %v7308_v0 }
 0x387   : > { %v7108_v55 = vpop.eup %7107  ;;  %6710 = vmatprep.subr.mxu1 %v7308_v0  ;;  %v1116_v56 = vmul.f32 %v7106_v54, %v7663_v9 }
 0x388   : > { %v1118_v58 = vmul.f32 %v7108_v55, %v7661_v8  ;;  %v2022_v5 = vpop.permute.xlu0 %2021  ;;  %v2258_v8 = vpop.permute.xlu1 %2257 }
 0x389   : > { %6698 = vmatmul.mubr.msk.f32.vlgmr.msra.gmra.mxu0 %vm1036_vm3, %v1116_v56 }
 0x38a   : > { %v7110_v59 = vpop.eup %7109  ;;  %6703 = vmatmul.mubr.msk.f32.vlgmr.msra.gmra.mxu1 %vm1036_vm3, %v1118_v58  ;;  %6706 = vmatpush3.msra.mxu0 %v7552_v45 }
 0x38b   : > { %v7112_v60 = vpop.eup %7111  ;;  %6711 = vmatpush3.msra.mxu1 %v7559_v49  ;;  %6707 = vmatprep.mubr.msk.f32.mxu0 %vm7309_vm1, %v7308_v0  ;;  %v1120_v63 = vmul.f32 %v7110_v59, %v7671_v13 }
 0x38c   : > { %6715 = vmatprep.subr.mxu0 %v7308_v0  ;;  %6712 = vmatprep.mubr.msk.f32.mxu1 %vm7309_vm1, %v7308_v0  ;;  %v1122_v2 = vmul.f32 %v7112_v60, %v7669_v12  ;;  %v2180_v4 = vpop.permute.xlu0 %2179  ;;  %v2256_v10 = vpop.permute.xlu1 %2255 }
 0x38d   : > { %6720 = vmatprep.subr.mxu1 %v7308_v0  ;;  %6708 = vmatmul.mubr.msk.f32.vlgmr.msra.gmra.mxu0 %vm1036_vm3, %v1120_v63 }
 0x38e   : > { %v7114_v3 = vpop.eup %7113  ;;  %6713 = vmatmul.mubr.msk.f32.vlgmr.msra.gmra.mxu1 %vm1036_vm3, %v1122_v2  ;;  %6716 = vmatpush3.msra.mxu0 %v7741_v1 }
 0x38f   : > { %6721 = vmatpush3.xpose.msk.msra.mxu1 %vm422_vm2, %v7697_v18  ;;  %6717 = vmatprep.mubr.msk.f32.mxu0 %vm7309_vm1, %v7308_v0  ;;  %v1124_v29 = vmul.f32 %v7114_v3, %v7677_v16 }
 0x390   : > { %6725 = vmatprep.subr.mxu0 %v7308_v0  ;;  %6722 = vmatprep.mubr.msk.f32.mxu1 %vm7309_vm1, %v7308_v0  ;;  %v2178_v9 = vpop.permute.xlu0 %2177 }
 0x391   : > { %6730 = vmatprep.subr.mxu1 %v7308_v0  ;;  %6718 = vmatmul.mubr.msk.f32.vlgmr.msra.gmra.mxu0 %vm1036_vm3, %v1124_v29 }
 0x392   : > { %6723 = vmatmul.mubr.msk.f32.vlgmr.msra.gmra.mxu1 %vm422_vm2, %v7701_v20  ;;  %6726 = vmatpush3.xpose.msk.msra.mxu0 %vm422_vm2, %v7699_v19 }
 0x393   : > { %6731 = vmatpush3.xpose.msk.msra.mxu1 %vm422_vm2, %v7703_v21  ;;  %6727 = vmatprep.mubr.msk.f32.mxu0 %vm7309_vm1, %v7308_v0 }
 0x394   : > { %6732 = vmatprep.mubr.msk.f32.mxu1 %vm7309_vm1, %v7308_v0  ;;  %6735 = vmatprep.subr.mxu0 %v7308_v0 }
 0x395   : > { %6740 = vmatprep.subr.mxu1 %v7308_v0  ;;  %6728 = vmatmul.mubr.msk.f32.vlgmr.msra.gmra.mxu0 %vm422_vm2, %v7705_v22 }
 0x396   : > { %6733 = vmatmul.mubr.msk.f32.vlgmr.msra.gmra.mxu1 %vm422_vm2, %v7707_v23  ;;  %6736 = vmatpush3.xpose.msk.msra.mxu0 %vm422_vm2, %v7709_v25 }
 0x397   : > { %6741 = vmatpush3.xpose.msk.msra.mxu1 %vm422_vm2, %v2024_v62  ;;  %6737 = vmatprep.mubr.msk.f32.mxu0 %vm7309_vm1, %v7308_v0 }
 0x398   : > { %6742 = vmatprep.mubr.msk.f32.mxu1 %vm7309_vm1, %v7308_v0  ;;  %6745 = vmatprep.subr.mxu0 %v7308_v0 }
 0x399   : > { %6750 = vmatprep.subr.mxu1 %v7308_v0  ;;  %6738 = vmatmul.mubr.msk.f32.vlgmr.msra.gmra.mxu0 %vm422_vm2, %v7711_v27 }
 0x39a   : > { %6743 = vmatmul.mubr.msk.f32.vlgmr.msra.gmra.mxu1 %vm422_vm2, %v2022_v5  ;;  %6746 = vmatpush3.xpose.msk.msra.mxu0 %vm422_vm2, %v2102_v6 }
 0x39b   : > { %6751 = vmatpush3.xpose.msk.msra.mxu1 %vm422_vm2, %v2180_v4  ;;  %6747 = vmatprep.mubr.msk.f32.mxu0 %vm7309_vm1, %v7308_v0 }
 0x39c   : > { %6752 = vmatprep.mubr.msk.f32.mxu1 %vm7309_vm1, %v7308_v0  ;;  %6755 = vmatprep.subr.mxu0 %v7308_v0 }
 0x39d   : > { %6748 = vmatmul.mubr.msk.f32.vlgmr.msra.gmra.mxu0 %vm422_vm2, %v2100_v7  ;;  %6760 = vmatprep.subr.mxu1 %v7308_v0 }
 0x39e   : > { %6753 = vmatmul.mubr.msk.f32.vlgmr.msra.gmra.mxu1 %vm422_vm2, %v2178_v9  ;;  %6756 = vmatpush3.xpose.msk.msra.mxu0 %vm422_vm2, %v2258_v8 }
 0x39f   : > { %6757 = vmatprep.mubr.msk.f32.mxu0 %vm7309_vm1, %v7308_v0  ;;  %6765 = vmatprep.subr.mxu0 %v7308_v0 }
 0x3a0   : > { %6762 = vmatprep.mubr.msk.f32.mxu1 %vm7309_vm1, %v7308_v0 }
 0x3a1   : > { %6758 = vmatmul.mubr.msk.f32.vlgmr.msra.gmra.mxu0 %vm422_vm2, %v2256_v10 }
 0x3a2   : > { %6767 = vmatprep.mubr.msk.f32.mxu0 %vm7309_vm1, %v7308_v0 }
 0x435   : > { %v7808_v11 = vpop.f32.mrf.mxu0 }
 0x437   : > { %v6689_v12 = vpop.f32.mrf.mxu0 }
 0x441   : > { %v7810_v13 = vpop.f32.mrf.mxu1 }
 0x443   : > { %v6684_v14 = vpop.f32.mrf.mxu1 }
 0x445   : > { %v7812_v15 = vpop.f32.mrf.mxu1 }
 0x447   : > { %v6694_v16 = vpop.f32.mrf.mxu1 }
 0x449   : > { %v7814_v17 = vpop.f32.mrf.mxu0 }
 0x44a   : > { %v7816_v18 = vpop.f32.mrf.mxu1 }
 0x44b   : > { %v6699_v19 = vpop.f32.mrf.mxu0 }
 0x44c   : > { %v6704_v20 = vpop.f32.mrf.mxu1 }
 0x44d   : > { %v7818_v21 = vpop.f32.mrf.mxu0 }
 0x44e   : > { %v7820_v22 = vpop.f32.mrf.mxu1 }
 0x44f   : > { %v6709_v23 = vpop.f32.mrf.mxu0 }
 0x450   : > { %v6714_v24 = vpop.f32.mrf.mxu1 }
 0x451   : > { %v7822_v25 = vpop.f32.mrf.mxu0 }
 0x452   : > { %v1783_v27 = vpop.f32.mrf.mxu1 }
 0x453   : > { %v6719_v28 = vpop.f32.mrf.mxu0  ;;  %v2333_v31 = vsel %vm1036_vm3, %v1783_v27, -inf }
 0x454   : > { %2334 = vmax.xlane.f32.xlu0 %v2333_v31  ;;  %v6724_v33 = vpop.f32.mrf.mxu1 }
 0x455   : > { %v1861_v35 = vpop.f32.mrf.mxu0 }
 0x456   : > { %v1939_v37 = vpop.f32.mrf.mxu1  ;;  %v2336_v40 = vsel %vm1036_vm3, %v1861_v35, -inf }
 0x457   : > { %2337 = vmax.xlane.f32.xlu1 %v2336_v40  ;;  %v6729_v42 = vpop.f32.mrf.mxu0  ;;  %v2339_v46 = vsel %vm1036_vm3, %v1939_v37, -inf }
 0x458   : > { %2340 = vmax.xlane.f32.xlu0 %v2339_v46  ;;  %v6734_v48 = vpop.f32.mrf.mxu1 }
 0x459   : > { %v2017_v44 = vpop.f32.mrf.mxu0 }
 0x45a   : > { %v2095_v50 = vpop.f32.mrf.mxu1  ;;  %v2342_v52 = vsel %vm1036_vm3, %v2017_v44, -inf }
 0x45b   : > { %v6739_v53 = vpop.f32.mrf.mxu0  ;;  %v2345_v54 = vsel %vm1036_vm3, %v2095_v50, -inf }
 0x45c   : > { %2343 = vmax.xlane.f32.xlu0 %v2342_v52  ;;  %2346 = vmax.xlane.f32.xlu1 %v2345_v54  ;;  %v6744_v55 = vpop.f32.mrf.mxu1 }
 0x45d   : > { %v2173_v56 = vpop.f32.mrf.mxu0 }
 0x45e   : > { %v2251_v58 = vpop.f32.mrf.mxu1  ;;  %v2348_v59 = vsel %vm1036_vm3, %v2173_v56, -inf }
 0x45f   : > { %v2351_v60 = vsel %vm1036_vm3, %v2251_v58, -inf  ;;  %v6749_v62 = vpop.f32.mrf.mxu0 }
 0x460   : > { %2352 = vmax.xlane.f32.xlu1 %v2351_v60  ;;  %v6754_v63 = vpop.f32.mrf.mxu1  ;;  %2349 = vmax.xlane.f32.xlu0 %v2348_v59 }
 0x461   : > { %v2329_v2 = vpop.f32.mrf.mxu0 }
 0x462   : > { %v2354_v3 = vsel %vm1036_vm3, %v2329_v2, -inf }
 0x463   : > { %v6759_v6 = vpop.f32.mrf.mxu0 }
 0x464   : > { %2355 = vmax.xlane.f32.xlu0 %v2354_v3 }
 0x471   : > { %2422 = vrot.lane.b32.xlu1 %v7618_v61, %s7312_s29 }
 0x475   : > { %2576 = vrot.lane.b32.xlu1 %v7527_v32, %s7312_s29 }
 0x479   : > { %2653 = vrot.lane.b32.xlu1 %v7534_v36, %s7312_s29 }
 0x47a   : > { %2499 = vrot.lane.b32.xlu0 %v7589_v57, %s7312_s29 }
 0x47d   : > { %2807 = vrot.lane.b32.xlu1 %v7552_v45, %s7312_s29 }
 0x47e   : > { %2730 = vrot.lane.b32.xlu0 %v7543_v41, %s7312_s29 }
 0x4dd   : > { %v2335_v29 = vpop.xlane.xlu0 %2334 }
 0x4de   : > { %v2357_v5 = vsub.f32 %v1783_v27, %v2335_v29 }
 0x4e0   : > { %v2365_v7 = vmul.f32 1.442695, %v2357_v5  ;;  %v2338_v4 = vpop.xlane.xlu1 %2337 }
 0x4e1   : > { %v2341_v8 = vpop.xlane.xlu0 %2340  ;;  %v2358_v9 = vsub.f32 %v1861_v35, %v2338_v4 }
 0x4e2   : > { %7115 = vpow2.f32 %v2365_v7  ;;  %v2359_v10 = vsub.f32 %v1939_v37, %v2341_v8 }
 0x4e3   : > { %v2367_v12 = vmul.f32 1.442695, %v2358_v9 }
 0x4e4   : > { %v2369_v14 = vmul.f32 1.442695, %v2359_v10 }
 0x4e5   : > { %7117 = vpow2.f32 %v2367_v12  ;;  %v2344_v16 = vpop.xlane.xlu0 %2343  ;;  %v2347_v19 = vpop.xlane.xlu1 %2346 }
 0x4e6   : > { %7119 = vpow2.f32 %v2369_v14  ;;  %v2360_v20 = vsub.f32 %v2017_v44, %v2344_v16  ;;  %v2361_v23 = vsub.f32 %v2095_v50, %v2347_v19 }
 0x4e8   : > { %v2371_v24 = vmul.f32 1.442695, %v2360_v20  ;;  %v2373_v28 = vmul.f32 1.442695, %v2361_v23 }
 0x4e9   : > { %v2350_v31 = vpop.xlane.xlu0 %2349  ;;  %v2353_v33 = vpop.xlane.xlu1 %2352 }
 0x4ea   : > { %7121 = vpow2.f32 %v2371_v24  ;;  %v2362_v27 = vsub.f32 %v2173_v56, %v2350_v31  ;;  %v2363_v40 = vsub.f32 %v2251_v58, %v2353_v33 }
 0x4eb   : > { %7123 = vpow2.f32 %v2373_v28 }
 0x4ec   : > { %v2375_v42 = vmul.f32 1.442695, %v2362_v27  ;;  %v2377_v35 = vmul.f32 1.442695, %v2363_v40 }
 0x4ed   : > { %v2356_v46 = vpop.xlane.xlu0 %2355  ;;  %v2423_v37 = vpop.permute.xlu1 %2422 }
 0x4ee   : > { %7125 = vpow2.f32 %v2375_v42  ;;  %v2364_v48 = vsub.f32 %v2329_v2, %v2356_v46  ;;  %6761 = vmatpush3.msra.mxu1 %v2423_v37 }
 0x4ef   : > { %v7844_v52 = vpop.eup %7115  ;;  %7127 = vpow2.f32 %v2377_v35  ;;  %6770 = vmatprep.subr.mxu1 %v7308_v0 }
 0x4f0   : > { %v2379_v44 = vmul.f32 1.442695, %v2364_v48  ;;  %v2381_v50 = vsel %vm1036_vm3, %v7844_v52, 0.0 }
 0x4f1   : > { %2382 = vadd.xlane.f32.xlu1 %v2381_v50  ;;  %v2500_v53 = vpop.permute.xlu0 %2499  ;;  %v2577_v4 = vpop.permute.xlu1 %2576 }
 0x4f2   : > { %v7849_v54 = vpop.eup %7117  ;;  %7129 = vpow2.f32 %v2379_v44  ;;  %6766 = vmatpush3.msra.mxu0 %v2500_v53 }
 0x4f3   : > { %v7851_v55 = vpop.eup %7119  ;;  %v2384_v56 = vsel %vm1036_vm3, %v7849_v54, 0.0  ;;  %6775 = vmatprep.subr.mxu0 %v7308_v0 }
 0x4f4   : > { %v2387_v58 = vsel %vm1036_vm3, %v7851_v55, 0.0  ;;  %2385 = vadd.xlane.f32.xlu0 %v2384_v56 }
 0x4f5   : > { %2388 = vadd.xlane.f32.xlu1 %v2387_v58  ;;  %v2654_v8 = vpop.permute.xlu1 %2653  ;;  %v2731_v10 = vpop.permute.xlu0 %2730 }
 0x4f7   : > { %v7858_v59 = vpop.eup %7121 }
 0x4f8   : > { %v7860_v60 = vpop.eup %7123  ;;  %v2390_v62 = vsel %vm1036_vm3, %v7858_v59, 0.0 }
 0x4f9   : > { %2391 = vadd.xlane.f32.xlu0 %v2390_v62  ;;  %v2393_v63 = vsel %vm1036_vm3, %v7860_v60, 0.0  ;;  %v2808_v9 = vpop.permute.xlu1 %2807 }
 0x4fa   : > { %2394 = vadd.xlane.f32.xlu1 %v2393_v63 }
 0x4fb   : > { %v7866_v2 = vpop.eup %7125 }
 0x4fc   : > { %v7868_v3 = vpop.eup %7127  ;;  %v2396_v6 = vsel %vm1036_vm3, %v7866_v2, 0.0 }
 0x4fd   : > { %2397 = vadd.xlane.f32.xlu0 %v2396_v6  ;;  %v2399_v29 = vsel %vm1036_vm3, %v7868_v3, 0.0 }
 0x4fe   : > { %2400 = vadd.xlane.f32.xlu1 %v2399_v29 }
 0x4ff   : > { %v7874_v5 = vpop.eup %7129 }
 0x500   : > { %v2402_v7 = vsel %vm1036_vm3, %v7874_v5, 0.0 }
 0x501   : > { %2403 = vadd.xlane.f32.xlu0 %v2402_v7 }
 0x50f   : > { %2961 = vrot.lane.b32.xlu1 %v7741_v1, %s7312_s29 }
 0x513   : > { %3375 = vrot.lane.b32.xlu1 %v7518_v26, %s7313_s9 }
 0x517   : > { %3373 = vrot.lane.b32.xlu1 %v7518_v26, %s7314_s10  ;;  %2884 = vrot.lane.b32.xlu0 %v7559_v49, %s7312_s29  ;;  %s7239_s29 = scalar_lea.vmem %s8387_s16, 1024 }
 0x518   : > { %p7240_p11 = scmp.ne.s32.totalorder %s8387_s16, %s7239_s29 }
 0x51a   : > { %p7241_p13 = pnand %p7240_p11, %p8446_p12 }
 0x51b   : > { %3531 = vrot.lane.b32.xlu1 %v7531_v34, %s7313_s9  ;;  %3297 = vrot.lane.b32.xlu0 %v7538_v38, %s7313_s9 }
 0x51c   : > { %p7242_p4 = pneg %p7241_p13 }
 0x51f   : > { %3529 = vrot.lane.b32.xlu1 %v7531_v34, %s7314_s10  ;;  %3295 = vrot.lane.b32.xlu0 %v7538_v38, %s7314_s10 }
 0x523   : > { %3687 = vrot.lane.b32.xlu1 %v7549_v43, %s7313_s9  ;;  %3453 = vrot.lane.b32.xlu0 %v7524_v30, %s7313_s9 }
 0x527   : > { %3685 = vrot.lane.b32.xlu1 %v7549_v43, %s7314_s10  ;;  %3451 = vrot.lane.b32.xlu0 %v7524_v30, %s7314_s10 }
 0x52b   : > { %3843 = vrot.lane.b32.xlu1 %v7563_v51, %s7313_s9  ;;  %3609 = vrot.lane.b32.xlu0 %v7540_v39, %s7313_s9 }
 0x52f   : > { %3841 = vrot.lane.b32.xlu1 %v7563_v51, %s7314_s10  ;;  %3607 = vrot.lane.b32.xlu0 %v7540_v39, %s7314_s10 }
 0x533   : > { %3765 = vrot.lane.b32.xlu0 %v7556_v47, %s7313_s9  ;;  %s7317_s9 = smov [#allocation5]  }
 0x537   : > { %3763 = vrot.lane.b32.xlu0 %v7556_v47, %s7314_s10 }
 0x57a   : > { %v2383_v12 = vpop.xlane.xlu1 %2382 }
 0x57b   : > { %7131 = vrcp.f32 %v2383_v12 }
 0x57d   : > { %v2386_v14 = vpop.xlane.xlu0 %2385 }
 0x57e   : > { %7133 = vrcp.f32 %v2386_v14  ;;  %v2389_v16 = vpop.xlane.xlu1 %2388 }
 0x57f   : > { %7135 = vrcp.f32 %v2389_v16 }
 0x582   : > { %v2392_v19 = vpop.xlane.xlu0 %2391 }
 0x583   : > { %7137 = vrcp.f32 %v2392_v19  ;;  %v2395_v20 = vpop.xlane.xlu1 %2394 }
 0x584   : > { %7139 = vrcp.f32 %v2395_v20 }
 0x586   : > { %v2398_v23 = vpop.xlane.xlu0 %2397 }
 0x587   : > { %7141 = vrcp.f32 %v2398_v23  ;;  %v2401_v24 = vpop.xlane.xlu1 %2400 }
 0x588   : > { %v7132_v28 = vpop.eup %7131  ;;  %7143 = vrcp.f32 %v2401_v24 }
 0x589   : > { %v2406_v31 = vmul.f32 %v7132_v28, %v7844_v52 }
 0x58a   : > { %v2404_v33 = vpop.xlane.xlu0 %2403 }
 0x58b   : > { %v7134_v27 = vpop.eup %7133  ;;  %7145 = vrcp.f32 %v2404_v33  ;;  %v2962_v40 = vpop.permute.xlu1 %2961  ;;  %6763 = vmatmul.mubr.msk.f32.vlgmr.msra.gmra.mxu1 %vm1036_vm3, %v2406_v31 }
 0x58c   : > { %v7136_v42 = vpop.eup %7135  ;;  %6771 = vmatpush3.msra.mxu1 %v2577_v4  ;;  %6772 = vmatprep.mubr.msk.f32.mxu1 %vm7309_vm1, %v7308_v0  ;;  %v2408_v35 = vmul.f32 %v7134_v27, %v7849_v54 }
 0x58d   : > { %6780 = vmatprep.subr.mxu1 %v7308_v0  ;;  %v2410_v46 = vmul.f32 %v7136_v42, %v7851_v55 }
 0x58e   : > { %6768 = vmatmul.mubr.msk.f32.vlgmr.msra.gmra.mxu0 %vm1036_vm3, %v2408_v35  ;;  %v2885_v54 = vpop.permute.xlu0 %2884 }
 0x58f   : > { %6773 = vmatmul.mubr.msk.f32.vlgmr.msra.gmra.mxu1 %vm1036_vm3, %v2410_v46  ;;  %6776 = vmatpush3.msra.mxu0 %v2654_v8  ;;  %v3376_v48 = vpop.permute.xlu1 %3375 }
 0x590   : > { %v7138_v37 = vpop.eup %7137  ;;  %6781 = vmatpush3.msra.mxu1 %v2731_v10  ;;  %6777 = vmatprep.mubr.msk.f32.mxu0 %vm7309_vm1, %v7308_v0 }
 0x591   : > { %v7140_v52 = vpop.eup %7139  ;;  %6782 = vmatprep.mubr.msk.f32.mxu1 %vm7309_vm1, %v7308_v0  ;;  %6785 = vmatprep.subr.mxu0 %v7308_v0  ;;  %v2412_v44 = vmul.f32 %v7138_v37, %v7858_v59 }
 0x592   : > { %6790 = vmatprep.subr.mxu1 %v7308_v0  ;;  %v2414_v50 = vmul.f32 %v7140_v52, %v7860_v60  ;;  %v412_v60 = vld [vmem:[%s8435_s3 + $0x8] sm:$0xff] }
 0x593   : > { %6778 = vmatmul.mubr.msk.f32.vlgmr.msra.gmra.mxu0 %vm1036_vm3, %v2412_v44  ;;  %v3374_v58 = vpop.permute.xlu1 %3373 }
 0x594   : > { %v7142_v53 = vpop.eup %7141  ;;  %6783 = vmatmul.mubr.msk.f32.vlgmr.msra.gmra.mxu1 %vm1036_vm3, %v2414_v50  ;;  %6786 = vmatpush3.msra.mxu0 %v2808_v9 }
 0x595   : > { %v7144_v55 = vpop.eup %7143  ;;  %6791 = vmatpush3.msra.mxu1 %v2885_v54  ;;  %6787 = vmatprep.mubr.msk.f32.mxu0 %vm7309_vm1, %v7308_v0  ;;  %v2416_v56 = vmul.f32 %v7142_v53, %v7866_v2  ;;  %v411_v2 = vld [vmem:[%s8435_s3] sm:$0xff] }
 0x596   : > { %6792 = vmatprep.mubr.msk.f32.mxu1 %vm7309_vm1, %v7308_v0  ;;  %6795 = vmatprep.subr.mxu0 %v7308_v0  ;;  %v2418_v59 = vmul.f32 %v7144_v55, %v7868_v3 }
 0x597   : > { %6788 = vmatmul.mubr.msk.f32.vlgmr.msra.gmra.mxu0 %vm1036_vm3, %v2416_v56  ;;  %v3532_v3 = vpop.permute.xlu1 %3531 }
 0x598   : > { %v7146_v62 = vpop.eup %7145  ;;  %6793 = vmatmul.mubr.msk.f32.vlgmr.msra.gmra.mxu1 %vm1036_vm3, %v2418_v59  ;;  %6796 = vmatpush3.msra.mxu0 %v2962_v40 }
 0x599   : > { %6797 = vmatprep.mubr.msk.f32.mxu0 %vm7309_vm1, %v7308_v0  ;;  %6816 = vmatprep.subr.mxu0 %v412_v60  ;;  %v2420_v63 = vmul.f32 %v7146_v62, %v7874_v5 }
 0x59b   : > { %6798 = vmatmul.mubr.msk.f32.vlgmr.msra.gmra.mxu0 %vm1036_vm3, %v2420_v63  ;;  %v3530_v6 = vpop.permute.xlu1 %3529 }
 0x59c   : > { %6817 = vmatpush3.msra.mxu0 %v412_v60  ;;  %6820 = vmatprep.mubr.msk.f32.mxu0 %vm422_vm2, %v7810_v13 }
 0x59d   : > { %6818 = vmatprep.subr.mxu0 %v411_v2 }
 0x59e   : > { %6819 = vmatpush3.msra.mxu0 %v411_v2 }
 0x59f   : > { %6837 = vmatprep.subr.mxu0 %v7308_v0  ;;  %6821 = vmatmul.mubr.msk.f32.vlgmr.msra.gmra.mxu0 %vm422_vm2, %v7808_v11  ;;  %v3688_v13 = vpop.permute.xlu1 %3687 }
 0x5a0   : > { %6838 = vmatpush3.xpose.msk.msra.mxu0 %vm422_vm2, %v3376_v48  ;;  %6823 = vmatprep.mubr.msk.f32.mxu0 %vm422_vm2, %v7812_v15 }
 0x5a1   : > { %6847 = vmatprep.subr.mxu0 %v7308_v0 }
 0x5a3   : > { %6824 = vmatmul.mubr.msk.f32.gmra.mxu0 %vm422_vm2, %v7814_v17  ;;  %v3686_v11 = vpop.permute.xlu1 %3685 }
 0x5a4   : > { %6826 = vmatprep.mubr.msk.f32.mxu0 %vm422_vm2, %v7816_v18  ;;  %v414_v18 = vld [vmem:[%s8435_s3 + $0x18] sm:$0xff] }
 0x5a5   : > { %6800 = vmatprep.subr.mxu1 %v414_v18 }
 0x5a6   : > { %6801 = vmatpush3.msra.mxu1 %v414_v18 }
 0x5a7   : > { %6827 = vmatmul.mubr.msk.f32.gmra.mxu0 %vm422_vm2, %v7818_v21  ;;  %v3844_v15 = vpop.permute.xlu1 %3843  ;;  %v413_v21 = vld [vmem:[%s8435_s3 + $0x10] sm:$0xff] }
 0x5a8   : > { %6829 = vmatprep.mubr.msk.f32.mxu0 %vm422_vm2, %v7820_v22  ;;  %6802 = vmatprep.subr.mxu1 %v413_v21  ;;  %v3298_v22 = vpop.permute.xlu0 %3297 }
 0x5a9   : > { %6803 = vmatpush3.msra.mxu1 %v413_v21 }
 0x5aa   : > { %6832 = vmatprep.subr.mxu1 %v7308_v0 }
 0x5ab   : > { %6830 = vmatmul.mubr.msk.f32.gmra.mxu0 %vm422_vm2, %v7822_v25  ;;  %v3842_v17 = vpop.permute.xlu1 %3841 }
 0x5ac   : > { %6839 = vmatprep.mubr.msk.f32.mxu0 %vm7309_vm1, %v7308_v0  ;;  %v3296_v25 = vpop.permute.xlu0 %3295 }
 0x5af   : > { %6840 = vmatmul.mubr.msk.f32.vlgmr.msra.gmra.mxu0 %vm422_vm2, %v3374_v58 }
 0x5b0   : > { %6848 = vmatpush3.xpose.msk.msra.mxu0 %vm422_vm2, %v3532_v3  ;;  %6849 = vmatprep.mubr.msk.f32.mxu0 %vm7309_vm1, %v7308_v0  ;;  %v3454_v5 = vpop.permute.xlu0 %3453 }
 0x5b1   : > { %6857 = vmatprep.subr.mxu0 %v7308_v0 }
 0x5b3   : > { %6850 = vmatmul.mubr.msk.f32.vlgmr.msra.gmra.mxu0 %vm422_vm2, %v3530_v6 }
 0x5b4   : > { %6858 = vmatpush3.xpose.msk.msra.mxu0 %vm422_vm2, %v3688_v13  ;;  %6859 = vmatprep.mubr.msk.f32.mxu0 %vm7309_vm1, %v7308_v0  ;;  %v3452_v12 = vpop.permute.xlu0 %3451 }
 0x5b5   : > { %6867 = vmatprep.subr.mxu0 %v7308_v0 }
 0x5b7   : > { %6860 = vmatmul.mubr.msk.f32.vlgmr.msra.gmra.mxu0 %vm422_vm2, %v3686_v11 }
 0x5b8   : > { %6868 = vmatpush3.xpose.msk.msra.mxu0 %vm422_vm2, %v3844_v15  ;;  %6869 = vmatprep.mubr.msk.f32.mxu0 %vm7309_vm1, %v7308_v0  ;;  %v3610_v28 = vpop.permute.xlu0 %3609 }
 0x5b9   : > { %6877 = vmatprep.subr.mxu0 %v7308_v0 }
 0x5bb   : > { %6870 = vmatmul.mubr.msk.f32.vlgmr.msra.gmra.mxu0 %vm422_vm2, %v3842_v17 }
 0x5bc   : > { %6879 = vmatprep.mubr.msk.f32.mxu0 %vm7309_vm1, %v7308_v0  ;;  %v3608_v42 = vpop.permute.xlu0 %3607 }
 0x5c0   : > { %v3766_v48 = vpop.permute.xlu0 %3765 }
 0x5c4   : > { %v3764_v53 = vpop.permute.xlu0 %3763 }
 0x64b   : > { %v2494_v29 = vpop.f32.mrf.mxu1 }
 0x64c   : > { %6804 = vmatprep.mubr.msk.f32.mxu1 %vm422_vm2, %v2494_v29 }
 0x64d   : > { %v6764_v7 = vpop.f32.mrf.mxu1 }
 0x64e   : > { %v2571_v4 = vpop.f32.mrf.mxu0 }
 0x64f   : > { %v2648_v8 = vpop.f32.mrf.mxu1  ;;  %6805 = vmatmul.mubr.msk.f32.vlgmr.msra.gmra.mxu1 %vm422_vm2, %v2571_v4 }
 0x650   : > { %6833 = vmatpush3.xpose.msk.msra.mxu1 %vm422_vm2, %v3298_v22  ;;  %v6769_v9 = vpop.f32.mrf.mxu0  ;;  %6807 = vmatprep.mubr.msk.f32.mxu1 %vm422_vm2, %v2648_v8 }
 0x651   : > { %v6774_v10 = vpop.f32.mrf.mxu1  ;;  %6842 = vmatprep.subr.mxu1 %v7308_v0 }
 0x653   : > { %v2725_v14 = vpop.f32.mrf.mxu0 }
 0x654   : > { %v2802_v16 = vpop.f32.mrf.mxu1  ;;  %6808 = vmatmul.mubr.msk.f32.gmra.mxu1 %vm422_vm2, %v2725_v14 }
 0x655   : > { %v6779_v19 = vpop.f32.mrf.mxu0  ;;  %6810 = vmatprep.mubr.msk.f32.mxu1 %vm422_vm2, %v2802_v16 }
 0x656   : > { %v6784_v20 = vpop.f32.mrf.mxu1 }
 0x657   : > { %v2879_v23 = vpop.f32.mrf.mxu0 }
 0x658   : > { %v2956_v24 = vpop.f32.mrf.mxu1  ;;  %6811 = vmatmul.mubr.msk.f32.gmra.mxu1 %vm422_vm2, %v2879_v23 }
 0x659   : > { %v6789_v31 = vpop.f32.mrf.mxu0  ;;  %6813 = vmatprep.mubr.msk.f32.mxu1 %vm422_vm2, %v2956_v24 }
 0x65a   : > { %v6794_v33 = vpop.f32.mrf.mxu1 }
 0x65b   : > { %v3033_v27 = vpop.f32.mrf.mxu0 }
 0x65c   : > { %6814 = vmatmul.mubr.msk.f32.gmra.mxu1 %vm422_vm2, %v3033_v27 }
 0x65d   : > { %v6799_v40 = vpop.f32.mrf.mxu0  ;;  %6834 = vmatprep.mubr.msk.f32.mxu1 %vm7309_vm1, %v7308_v0 }
 0x65f   : > { %v8002_v35 = vpop.f32.mrf.mxu0 }
 0x660   : > { %6835 = vmatmul.mubr.msk.f32.vlgmr.msra.gmra.mxu1 %vm422_vm2, %v3296_v25 }
 0x661   : > { %6843 = vmatpush3.xpose.msk.msra.mxu1 %vm422_vm2, %v3454_v5  ;;  %v8006_v46 = vpop.f32.mrf.mxu0  ;;  %6844 = vmatprep.mubr.msk.f32.mxu1 %vm7309_vm1, %v7308_v0 }
 0x662   : > { %6852 = vmatprep.subr.mxu1 %v7308_v0 }
 0x663   : > { %v8011_v37 = vpop.f32.mrf.mxu0 }
 0x664   : > { %6845 = vmatmul.mubr.msk.f32.vlgmr.msra.gmra.mxu1 %vm422_vm2, %v3452_v12 }
 0x665   : > { %6853 = vmatpush3.xpose.msk.msra.mxu1 %vm422_vm2, %v3610_v28  ;;  %v8015_v52 = vpop.f32.mrf.mxu0  ;;  %6854 = vmatprep.mubr.msk.f32.mxu1 %vm7309_vm1, %v7308_v0 }
 0x666   : > { %6862 = vmatprep.subr.mxu1 %v7308_v0 }
 0x667   : > { %v8020_v44 = vpop.f32.mrf.mxu0 }
 0x668   : > { %6855 = vmatmul.mubr.msk.f32.vlgmr.msra.gmra.mxu1 %vm422_vm2, %v3608_v42 }
 0x669   : > { %6863 = vmatpush3.xpose.msk.msra.mxu1 %vm422_vm2, %v3766_v48  ;;  %v8024_v50 = vpop.f32.mrf.mxu0  ;;  %6864 = vmatprep.mubr.msk.f32.mxu1 %vm7309_vm1, %v7308_v0 }
 0x66a   : > { %6872 = vmatprep.subr.mxu1 %v7308_v0 }
 0x66b   : > { %v8029_v54 = vpop.f32.mrf.mxu0 }
 0x66c   : > { %6865 = vmatmul.mubr.msk.f32.vlgmr.msra.gmra.mxu1 %vm422_vm2, %v3764_v53 }
 0x66d   : > { %v8032_v55 = vpop.f32.mrf.mxu0  ;;  %6874 = vmatprep.mubr.msk.f32.mxu1 %vm7309_vm1, %v7308_v0 }
 0x66f   : > { %v3447_v56 = vpop.f32.mrf.mxu0 }
 0x670   : > { %v3922_v58 = vsel %vm1036_vm3, %v3447_v56, -inf }
 0x671   : > { %3923 = vmax.xlane.f32.xlu1 %v3922_v58  ;;  %v6841_v59 = vpop.f32.mrf.mxu0 }
 0x673   : > { %v3603_v60 = vpop.f32.mrf.mxu0 }
 0x674   : > { %v3928_v20 = vsel %vm1036_vm3, %v3603_v60, -inf }
 0x675   : > { %v6851_v62 = vpop.f32.mrf.mxu0 }
 0x677   : > { %v8037_v63 = vpop.f32.mrf.mxu0 }
 0x678   : > { %v3934_v31 = vsel %vm1036_vm3, %v8037_v63, -inf }
 0x679   : > { %v6861_v2 = vpop.f32.mrf.mxu0 }
 0x67b   : > { %v8039_v3 = vpop.f32.mrf.mxu0 }
 0x67c   : > { %v3940_v27 = vsel %vm1036_vm3, %v8039_v3, -inf }
 0x67d   : > { %v6871_v6 = vpop.f32.mrf.mxu0 }
 0x6fa   : > { %v3924_v21 = vpop.xlane.xlu1 %3923 }
 0x6fb   : > { %v3944_v29 = vsub.f32 %v3447_v56, %v3924_v21 }
 0x6fd   : > { %v3953_v4 = vmul.f32 1.442695, %v3944_v29 }
 0x6ff   : > { %7147 = vpow2.f32 %v3953_v4 }
 0x70c   : > { %v8066_v40 = vpop.eup %7147 }
 0x70d   : > { %v3970_v42 = vsel %vm1036_vm3, %v8066_v40, 0.0 }
 0x70f   : > { %v8041_v13 = vpop.f32.mrf.mxu1 }
 0x711   : > { %v8043_v11 = vpop.f32.mrf.mxu1 }
 0x714   : > { %v8045_v15 = vpop.f32.mrf.mxu1 }
 0x716   : > { %v8047_v17 = vpop.f32.mrf.mxu1 }
 0x718   : > { %v8049_v18 = vpop.f32.mrf.mxu1 }
 0x71a   : > { %v8051_v22 = vpop.f32.mrf.mxu1 }
 0x71c   : > { %v8053_v25 = vpop.f32.mrf.mxu1 }
 0x71e   : > { %v8055_v5 = vpop.f32.mrf.mxu1 }
 0x720   : > { %v3369_v7 = vpop.f32.mrf.mxu1 }
 0x721   : > { %v3919_v8 = vsel %vm1036_vm3, %v3369_v7, -inf }
 0x722   : > { %3920 = vmax.xlane.f32.xlu0 %v3919_v8  ;;  %v6836_v9 = vpop.f32.mrf.mxu1 }
 0x724   : > { %v3525_v10 = vpop.f32.mrf.mxu1 }
 0x725   : > { %v3925_v12 = vsel %vm1036_vm3, %v3525_v10, -inf }
 0x726   : > { %3926 = vmax.xlane.f32.xlu0 %v3925_v12  ;;  %v6846_v14 = vpop.f32.mrf.mxu1 }
 0x728   : > { %v3681_v16 = vpop.f32.mrf.mxu1 }
 0x729   : > { %v3931_v19 = vsel %vm1036_vm3, %v3681_v16, -inf }
 0x72a   : > { %v6856_v23 = vpop.f32.mrf.mxu1  ;;  %3932 = vmax.xlane.f32.xlu1 %v3931_v19  ;;  %3929 = vmax.xlane.f32.xlu0 %v3928_v20 }
 0x72c   : > { %v3837_v24 = vpop.f32.mrf.mxu1 }
 0x72d   : > { %v3937_v28 = vsel %vm1036_vm3, %v3837_v24, -inf }
 0x72e   : > { %v6866_v33 = vpop.f32.mrf.mxu1  ;;  %3938 = vmax.xlane.f32.xlu1 %v3937_v28  ;;  %3935 = vmax.xlane.f32.xlu0 %v3934_v31 }
 0x732   : > { %3941 = vmax.xlane.f32.xlu0 %v3940_v27 }
 0x736   : > { %3971 = vadd.xlane.f32.xlu0 %v3970_v42 }
 0x73f   : > { %4007 = vrot.lane.b32.xlu1 %v7618_v61, %s7314_s10 }
 0x743   : > { %4159 = vrot.lane.b32.xlu1 %v7527_v32, %s7314_s10 }
 0x747   : > { %4235 = vrot.lane.b32.xlu1 %v7534_v36, %s7314_s10 }
 0x74b   : > { %4387 = vrot.lane.b32.xlu1 %v7552_v45, %s7314_s10 }
 0x7ab   : > { %v3921_v48 = vpop.xlane.xlu0 %3920 }
 0x7ac   : > { %v3943_v53 = vsub.f32 %v3369_v7, %v3921_v48 }
 0x7ae   : > { %v3951_v56 = vmul.f32 1.442695, %v3943_v53 }
 0x7af   : > { %v3927_v58 = vpop.xlane.xlu0 %3926 }
 0x7b0   : > { %7149 = vpow2.f32 %v3951_v56  ;;  %v3945_v59 = vsub.f32 %v3525_v10, %v3927_v58 }
 0x7b2   : > { %v3955_v62 = vmul.f32 1.442695, %v3945_v59 }
 0x7b3   : > { %v3930_v2 = vpop.xlane.xlu0 %3929  ;;  %v3933_v6 = vpop.xlane.xlu1 %3932 }
 0x7b4   : > { %7151 = vpow2.f32 %v3955_v62  ;;  %v3946_v21 = vsub.f32 %v3603_v60, %v3930_v2  ;;  %v3947_v29 = vsub.f32 %v3681_v16, %v3933_v6 }
 0x7b6   : > { %v3957_v4 = vmul.f32 1.442695, %v3946_v21  ;;  %v3959_v8 = vmul.f32 1.442695, %v3947_v29 }
 0x7b7   : > { %v3936_v9 = vpop.xlane.xlu0 %3935  ;;  %v3939_v12 = vpop.xlane.xlu1 %3938 }
 0x7b8   : > { %7153 = vpow2.f32 %v3957_v4  ;;  %v3948_v14 = vsub.f32 %v8037_v63, %v3936_v9  ;;  %v3949_v19 = vsub.f32 %v3837_v24, %v3939_v12 }
 0x7b9   : > { %7155 = vpow2.f32 %v3959_v8 }
 0x7ba   : > { %v3961_v7 = vmul.f32 1.442695, %v3948_v14  ;;  %v3963_v20 = vmul.f32 1.442695, %v3949_v19 }
 0x7bb   : > { %v3942_v23 = vpop.xlane.xlu0 %3941  ;;  %v4008_v28 = vpop.permute.xlu1 %4007 }
 0x7bc   : > { %7157 = vpow2.f32 %v3961_v7  ;;  %v3950_v10 = vsub.f32 %v8039_v3, %v3942_v23  ;;  %6873 = vmatpush3.msra.mxu1 %v4008_v28 }
 0x7bd   : > { %v8080_v31 = vpop.eup %7149  ;;  %7159 = vpow2.f32 %v3963_v20  ;;  %6882 = vmatprep.subr.mxu1 %v7308_v0 }
 0x7be   : > { %v3965_v60 = vmul.f32 1.442695, %v3950_v10  ;;  %v3967_v16 = vsel %vm1036_vm3, %v8080_v31, 0.0 }
 0x7bf   : > { %3968 = vadd.xlane.f32.xlu1 %v3967_v16 }
 0x7c0   : > { %7161 = vpow2.f32 %v3965_v60 }
 0x7c1   : > { %v8085_v63 = vpop.eup %7151 }
 0x7c2   : > { %v3973_v24 = vsel %vm1036_vm3, %v8085_v63, 0.0 }
 0x7c3   : > { %3974 = vadd.xlane.f32.xlu1 %v3973_v24 }
 0x7c5   : > { %v8089_v33 = vpop.eup %7153 }
 0x7c6   : > { %v8091_v3 = vpop.eup %7155  ;;  %v3976_v27 = vsel %vm1036_vm3, %v8089_v33, 0.0 }
 0x7c7   : > { %3977 = vadd.xlane.f32.xlu0 %v3976_v27  ;;  %v3979_v42 = vsel %vm1036_vm3, %v8091_v3, 0.0 }
 0x7c8   : > { %3980 = vadd.xlane.f32.xlu1 %v3979_v42 }
 0x7c9   : > { %v8097_v48 = vpop.eup %7157 }
 0x7ca   : > { %v8099_v53 = vpop.eup %7159  ;;  %v3982_v56 = vsel %vm1036_vm3, %v8097_v48, 0.0 }
 0x7cb   : > { %3983 = vadd.xlane.f32.xlu0 %v3982_v56  ;;  %v3985_v58 = vsel %vm1036_vm3, %v8099_v53, 0.0 }
 0x7cc   : > { %3986 = vadd.xlane.f32.xlu1 %v3985_v58 }
 0x7cd   : > { %v8105_v59 = vpop.eup %7161 }
 0x7ce   : > { %v3988_v62 = vsel %vm1036_vm3, %v8105_v59, 0.0 }
 0x7cf   : > { %3989 = vadd.xlane.f32.xlu0 %v3988_v62 }
 0x7dd   : > { %4539 = vrot.lane.b32.xlu1 %v7741_v1, %s7314_s10 }
 0x7e1   : > { %4752 = vrot.lane.b32.xlu1 %v7538_v38, %s7315_s8 }
 0x7e5   : > { %4830 = vrot.lane.b32.xlu1 %v7518_v26, %s7315_s8  ;;  %4083 = vrot.lane.b32.xlu0 %v7589_v57, %s7314_s10 }
 0x7e9   : > { %4908 = vrot.lane.b32.xlu1 %v7524_v30, %s7315_s8  ;;  %4311 = vrot.lane.b32.xlu0 %v7543_v41, %s7314_s10 }
 0x7ed   : > { %4986 = vrot.lane.b32.xlu1 %v7531_v34, %s7315_s8  ;;  %4463 = vrot.lane.b32.xlu0 %v7559_v49, %s7314_s10  ;;  %s7243_s10 = sshll.u32 %s7317_s9, 4  ;;  %s7244_s10 = int_to_ptr.vmem [resolvable:$false] %s7243_s10 }
 0x7ee   : > { %s7245_s11 = scalar_lea.vmem %s7244_s10, 2048  ;;  %p7246_p5 = scmp.lt.s32.totalorder %s8387_s16, %s7244_s10 }
 0x7ef   : > { %p7247_p7 = scmp.lt.s32.totalorder %s7245_s11, %s7239_s29 }
 0x7f1   : > { %5144 = vrot.lane.b32.xlu1 %v7549_v43, %s7316_s28  ;;  %4754 = vrot.lane.b32.xlu0 %v7538_v38, %s7316_s28  ;;  %p7248_p8 = por %p7247_p7, %p7246_p5 }
 0x7f3   : > { %p7249_p10 = pnand %p7248_p8, %p7242_p4 }
 0x7f5   : > { %5142 = vrot.lane.b32.xlu1 %v7549_v43, %s7315_s8  ;;  %4832 = vrot.lane.b32.xlu0 %v7518_v26, %s7316_s28  ;;  %v4160_v26 = vpop.permute.xlu1 %4159 }
 0x7f9   : > { %5300 = vrot.lane.b32.xlu1 %v7563_v51, %s7316_s28  ;;  %4910 = vrot.lane.b32.xlu0 %v7524_v30, %s7316_s28  ;;  %v4236_v38 = vpop.permute.xlu1 %4235  ;;  %v3972_v30 = vpop.xlane.xlu0 %3971 }
 0x7fd   : > { %5298 = vrot.lane.b32.xlu1 %v7563_v51, %s7315_s8  ;;  %4988 = vrot.lane.b32.xlu0 %v7531_v34, %s7316_s28  ;;  %v4388_v43 = vpop.permute.xlu1 %4387 }
 0x801   : > { %5066 = vrot.lane.b32.xlu0 %v7540_v39, %s7316_s28 }
 0x805   : > { %5064 = vrot.lane.b32.xlu0 %v7540_v39, %s7315_s8 }
 0x809   : > { %5222 = vrot.lane.b32.xlu0 %v7556_v47, %s7316_s28 }
 0x80d   : > { %5220 = vrot.lane.b32.xlu0 %v7556_v47, %s7315_s8 }
 0x848   : > { %v3969_v2 = vpop.xlane.xlu1 %3968 }
 0x849   : > { %7163 = vrcp.f32 %v3969_v2 }
 0x84a   : > { %7165 = vrcp.f32 %v3972_v30  ;;  %v416_v30 = vld [vmem:[%s8435_s3 + $0x28] sm:$0xff] }
 0x84c   : > { %v3975_v51 = vpop.xlane.xlu1 %3974 }
 0x84d   : > { %7167 = vrcp.f32 %v3975_v51  ;;  %v415_v51 = vld [vmem:[%s8435_s3 + $0x20] sm:$0xff] }
 0x850   : > { %v3978_v34 = vpop.xlane.xlu0 %3977 }
 0x851   : > { %7169 = vrcp.f32 %v3978_v34  ;;  %v3981_v6 = vpop.xlane.xlu1 %3980 }
 0x852   : > { %7171 = vrcp.f32 %v3981_v6 }
 0x854   : > { %v3984_v21 = vpop.xlane.xlu0 %3983 }
 0x855   : > { %7173 = vrcp.f32 %v3984_v21  ;;  %v3987_v39 = vpop.xlane.xlu1 %3986 }
 0x856   : > { %v7164_v29 = vpop.eup %7163  ;;  %7175 = vrcp.f32 %v3987_v39 }
 0x857   : > { %v3992_v47 = vmul.f32 %v7164_v29, %v8080_v31  ;;  %v7166_v8 = vpop.eup %7165 }
 0x858   : > { %v3990_v4 = vpop.xlane.xlu0 %3989  ;;  %v3994_v7 = vmul.f32 %v7166_v8, %v8066_v40 }
 0x859   : > { %7177 = vrcp.f32 %v3990_v4  ;;  %v4540_v9 = vpop.permute.xlu1 %4539  ;;  %6875 = vmatmul.mubr.msk.f32.vlgmr.msra.gmra.mxu1 %vm1036_vm3, %v3992_v47 }
 0x85a   : > { %v7168_v12 = vpop.eup %7167  ;;  %6883 = vmatpush3.msra.mxu1 %v4160_v26  ;;  %6884 = vmatprep.mubr.msk.f32.mxu1 %vm7309_vm1, %v7308_v0 }
 0x85b   : > { %v3996_v14 = vmul.f32 %v7168_v12, %v8085_v63  ;;  %6892 = vmatprep.subr.mxu1 %v7308_v0 }
 0x85c   : > { %v4084_v19 = vpop.permute.xlu0 %4083 }
 0x85d   : > { %v4753_v20 = vpop.permute.xlu1 %4752  ;;  %6878 = vmatpush3.msra.mxu0 %v4084_v19  ;;  %6885 = vmatmul.mubr.msk.f32.vlgmr.msra.gmra.mxu1 %vm1036_vm3, %v3996_v14 }
 0x85e   : > { %v7170_v23 = vpop.eup %7169  ;;  %6880 = vmatmul.mubr.msk.f32.vlgmr.msra.gmra.mxu0 %vm1036_vm3, %v3994_v7  ;;  %6887 = vmatprep.subr.mxu0 %v7308_v0 }
 0x85f   : > { %v7172_v28 = vpop.eup %7171  ;;  %6888 = vmatpush3.msra.mxu0 %v4236_v38  ;;  %6889 = vmatprep.mubr.msk.f32.mxu0 %vm7309_vm1, %v7308_v0  ;;  %v3998_v10 = vmul.f32 %v7170_v23, %v8089_v33 }
 0x860   : > { %v4312_v31 = vpop.permute.xlu0 %4311  ;;  %6894 = vmatprep.mubr.msk.f32.mxu1 %vm7309_vm1, %v7308_v0  ;;  %6897 = vmatprep.subr.mxu0 %v7308_v0  ;;  %v4000_v40 = vmul.f32 %v7172_v28, %v8091_v3 }
 0x861   : > { %v4831_v60 = vpop.permute.xlu1 %4830  ;;  %6893 = vmatpush3.msra.mxu1 %v4312_v31 }
 0x862   : > { %v7174_v16 = vpop.eup %7173  ;;  %6890 = vmatmul.mubr.msk.f32.vlgmr.msra.gmra.mxu0 %vm1036_vm3, %v3998_v10  ;;  %6895 = vmatmul.mubr.msk.f32.vlgmr.msra.gmra.mxu1 %vm1036_vm3, %v4000_v40 }
 0x863   : > { %v7176_v63 = vpop.eup %7175  ;;  %6898 = vmatpush3.msra.mxu0 %v4388_v43  ;;  %6902 = vmatprep.subr.mxu1 %v7308_v0  ;;  %v4002_v24 = vmul.f32 %v7174_v16, %v8097_v48 }
 0x864   : > { %v4464_v33 = vpop.permute.xlu0 %4463  ;;  %6899 = vmatprep.mubr.msk.f32.mxu0 %vm7309_vm1, %v7308_v0  ;;  %6904 = vmatprep.mubr.msk.f32.mxu1 %vm7309_vm1, %v7308_v0  ;;  %v4004_v3 = vmul.f32 %v7176_v63, %v8099_v53 }
 0x865   : > { %v4909_v27 = vpop.permute.xlu1 %4908  ;;  %6903 = vmatpush3.msra.mxu1 %v4464_v33  ;;  %6907 = vmatprep.subr.mxu0 %v7308_v0 }
 0x866   : > { %v7178_v42 = vpop.eup %7177  ;;  %6900 = vmatmul.mubr.msk.f32.vlgmr.msra.gmra.mxu0 %vm1036_vm3, %v4002_v24  ;;  %6905 = vmatmul.mubr.msk.f32.vlgmr.msra.gmra.mxu1 %vm1036_vm3, %v4004_v3 }
 0x867   : > { %6908 = vmatpush3.msra.mxu0 %v4540_v9  ;;  %6909 = vmatprep.mubr.msk.f32.mxu0 %vm7309_vm1, %v7308_v0  ;;  %v4006_v48 = vmul.f32 %v7178_v42, %v8105_v59 }
 0x868   : > { %v4755_v56 = vpop.permute.xlu0 %4754  ;;  %6928 = vmatprep.subr.mxu0 %v7308_v0  ;;  %6912 = vmatprep.subr.mxu1 %v416_v30 }
 0x869   : > { %v4987_v58 = vpop.permute.xlu1 %4986  ;;  %6913 = vmatpush3.msra.mxu1 %v416_v30 }
 0x86a   : > { %6910 = vmatmul.mubr.msk.f32.vlgmr.msra.gmra.mxu0 %vm1036_vm3, %v4006_v48  ;;  %6914 = vmatprep.subr.mxu1 %v415_v51 }
 0x86b   : > { %6929 = vmatpush3.xpose.msk.msra.mxu0 %vm422_vm2, %v4755_v56  ;;  %6930 = vmatprep.mubr.msk.f32.mxu0 %vm7309_vm1, %v7308_v0 }
 0x86c   : > { %v4833_v53 = vpop.permute.xlu0 %4832  ;;  %6933 = vmatprep.subr.mxu0 %v7308_v0  ;;  %6915 = vmatpush3.msra.mxu1 %v415_v51 }
 0x86d   : > { %v5145_v62 = vpop.permute.xlu1 %5144  ;;  %6948 = vmatprep.subr.mxu1 %v7308_v0 }
 0x86e   : > { %6931 = vmatmul.mubr.msk.f32.vlgmr.msra.gmra.mxu0 %vm422_vm2, %v4753_v20 }
 0x86f   : > { %6934 = vmatpush3.xpose.msk.msra.mxu0 %vm422_vm2, %v4833_v53  ;;  %6935 = vmatprep.mubr.msk.f32.mxu0 %vm7309_vm1, %v7308_v0 }
 0x870   : > { %v4911_v59 = vpop.permute.xlu0 %4910  ;;  %6938 = vmatprep.subr.mxu0 %v7308_v0 }
 0x871   : > { %v5143_v38 = vpop.permute.xlu1 %5142 }
 0x872   : > { %6936 = vmatmul.mubr.msk.f32.vlgmr.msra.gmra.mxu0 %vm422_vm2, %v4831_v60 }
 0x873   : > { %6939 = vmatpush3.xpose.msk.msra.mxu0 %vm422_vm2, %v4911_v59  ;;  %6940 = vmatprep.mubr.msk.f32.mxu0 %vm7309_vm1, %v7308_v0 }
 0x874   : > { %v4989_v26 = vpop.permute.xlu0 %4988  ;;  %6943 = vmatprep.subr.mxu0 %v7308_v0 }
 0x875   : > { %v5301_v43 = vpop.permute.xlu1 %5300 }
 0x876   : > { %6941 = vmatmul.mubr.msk.f32.vlgmr.msra.gmra.mxu0 %vm422_vm2, %v4909_v27 }
 0x877   : > { %6944 = vmatpush3.xpose.msk.msra.mxu0 %vm422_vm2, %v4989_v26  ;;  %6945 = vmatprep.mubr.msk.f32.mxu0 %vm7309_vm1, %v7308_v0 }
 0x878   : > { %6953 = vmatprep.subr.mxu0 %v7308_v0  ;;  %v5067_v29 = vpop.permute.xlu0 %5066 }
 0x879   : > { %v5299_v2 = vpop.permute.xlu1 %5298 }
 0x87a   : > { %6946 = vmatmul.mubr.msk.f32.vlgmr.msra.gmra.mxu0 %vm422_vm2, %v4987_v58 }
 0x87b   : > { %6954 = vmatpush3.xpose.msk.msra.mxu0 %vm422_vm2, %v5145_v62  ;;  %6955 = vmatprep.mubr.msk.f32.mxu0 %vm7309_vm1, %v7308_v0 }
 0x87c   : > { %6963 = vmatprep.subr.mxu0 %v7308_v0  ;;  %v5065_v19 = vpop.permute.xlu0 %5064 }
 0x87e   : > { %6956 = vmatmul.mubr.msk.f32.vlgmr.msra.gmra.mxu0 %vm422_vm2, %v5143_v38 }
 0x87f   : > { %6964 = vmatpush3.xpose.msk.msra.mxu0 %vm422_vm2, %v5301_v43  ;;  %6965 = vmatprep.mubr.msk.f32.mxu0 %vm7309_vm1, %v7308_v0 }
 0x880   : > { %6973 = vmatprep.subr.mxu0 %v7308_v0  ;;  %v5223_v31 = vpop.permute.xlu0 %5222 }
 0x882   : > { %6966 = vmatmul.mubr.msk.f32.vlgmr.msra.gmra.mxu0 %vm422_vm2, %v5299_v2 }
 0x883   : > { %6975 = vmatprep.mubr.msk.f32.mxu0 %vm7309_vm1, %v7308_v0 }
 0x884   : > { %v5221_v24 = vpop.permute.xlu0 %5220 }
 0x919   : > { %v4079_v34 = vpop.f32.mrf.mxu1 }
 0x91a   : > { %6916 = vmatprep.mubr.msk.f32.mxu1 %vm422_vm2, %v4079_v34 }
 0x91b   : > { %v6876_v6 = vpop.f32.mrf.mxu1 }
 0x91d   : > { %v4231_v21 = vpop.f32.mrf.mxu1 }
 0x91e   : > { %v4155_v39 = vpop.f32.mrf.mxu0 }
 0x91f   : > { %v6886_v47 = vpop.f32.mrf.mxu1  ;;  %6917 = vmatmul.mubr.msk.f32.vlgmr.msra.gmra.mxu1 %vm422_vm2, %v4155_v39 }
 0x920   : > { %6949 = vmatpush3.xpose.msk.msra.mxu1 %vm422_vm2, %v5067_v29  ;;  %v6881_v4 = vpop.f32.mrf.mxu0  ;;  %6919 = vmatprep.mubr.msk.f32.mxu1 %vm422_vm2, %v4231_v21 }
 0x921   : > { %6958 = vmatprep.subr.mxu1 %v7308_v0 }
 0x922   : > { %v4307_v8 = vpop.f32.mrf.mxu0  ;;  %v4383_v9 = vpop.f32.mrf.mxu1 }
 0x923   : > { %6920 = vmatmul.mubr.msk.f32.gmra.mxu1 %vm422_vm2, %v4307_v8 }
 0x924   : > { %v6891_v12 = vpop.f32.mrf.mxu0  ;;  %v6896_v14 = vpop.f32.mrf.mxu1  ;;  %6922 = vmatprep.mubr.msk.f32.mxu1 %vm422_vm2, %v4383_v9 }
 0x926   : > { %v4459_v7 = vpop.f32.mrf.mxu0  ;;  %v4535_v20 = vpop.f32.mrf.mxu1 }
 0x927   : > { %6923 = vmatmul.mubr.msk.f32.gmra.mxu1 %vm422_vm2, %v4459_v7 }
 0x928   : > { %v6901_v23 = vpop.f32.mrf.mxu0  ;;  %v6906_v28 = vpop.f32.mrf.mxu1  ;;  %6925 = vmatprep.mubr.msk.f32.mxu1 %vm422_vm2, %v4535_v20 }
 0x92a   : > { %v4611_v10 = vpop.f32.mrf.mxu0 }
 0x92b   : > { %6926 = vmatmul.mubr.msk.f32.gmra.mxu1 %vm422_vm2, %v4611_v10 }
 0x92c   : > { %v6911_v40 = vpop.f32.mrf.mxu0  ;;  %6950 = vmatprep.mubr.msk.f32.mxu1 %vm7309_vm1, %v7308_v0 }
 0x92e   : > { %v8226_v60 = vpop.f32.mrf.mxu0 }
 0x92f   : > { %6951 = vmatmul.mubr.msk.f32.vlgmr.msra.gmra.mxu1 %vm422_vm2, %v5065_v19  ;;  %v5376_v16 = vsel %vm1036_vm3, %v8226_v60, -inf }
 0x930   : > { %6959 = vmatpush3.xpose.msk.msra.mxu1 %vm422_vm2, %v5223_v31  ;;  %5377 = vmax.xlane.f32.xlu0 %v5376_v16  ;;  %v6932_v63 = vpop.f32.mrf.mxu0  ;;  %v3262_v16 = vadd.f32 %v8002_v35, %v8041_v13  ;;  %v3267_v13 = vadd.f32 %v8015_v52, %v8047_v17  ;;  %v3292_v17 = vadd.f32 %v8029_v54, %v8053_v25 }
 0x931   : > { %6960 = vmatprep.mubr.msk.f32.mxu1 %vm7309_vm1, %v7308_v0  ;;  %6968 = vmatprep.subr.mxu1 %v7308_v0 }
 0x932   : > { %v4904_v33 = vpop.f32.mrf.mxu0 }
 0x933   : > { %6961 = vmatmul.mubr.msk.f32.vlgmr.msra.gmra.mxu1 %vm422_vm2, %v5221_v24  ;;  %v5379_v3 = vsel %vm1036_vm3, %v4904_v33, -inf }
 0x934   : > { %5380 = vmax.xlane.f32.xlu1 %v5379_v3  ;;  %v6937_v27 = vpop.f32.mrf.mxu0  ;;  %6970 = vmatprep.mubr.msk.f32.mxu1 %vm7309_vm1, %v7308_v0 }
 0x936   : > { %v8239_v42 = vpop.f32.mrf.mxu0 }
 0x937   : > { %v5382_v48 = vsel %vm1036_vm3, %v8239_v42, -inf }
 0x938   : > { %5383 = vmax.xlane.f32.xlu0 %v5382_v48  ;;  %v6942_v56 = vpop.f32.mrf.mxu0 }
 0x93a   : > { %v5060_v58 = vpop.f32.mrf.mxu0 }
 0x93b   : > { %v5385_v53 = vsel %vm1036_vm3, %v5060_v58, -inf }
 0x93c   : > { %5386 = vmax.xlane.f32.xlu0 %v5385_v53  ;;  %v6947_v62 = vpop.f32.mrf.mxu0 }
 0x93e   : > { %v5216_v59 = vpop.f32.mrf.mxu0 }
 0x93f   : > { %v5391_v26 = vsel %vm1036_vm3, %v5216_v59, -inf }
 0x940   : > { %5392 = vmax.xlane.f32.xlu0 %v5391_v26  ;;  %v6957_v38 = vpop.f32.mrf.mxu0 }
 0x942   : > { %v5372_v43 = vpop.f32.mrf.mxu0 }
 0x943   : > { %v5397_v2 = vsel %vm1036_vm3, %v5372_v43, -inf }
 0x944   : > { %5398 = vmax.xlane.f32.xlu0 %v5397_v2  ;;  %v6967_v30 = vpop.f32.mrf.mxu0 }
 0x9b9   : > { %v5378_v51 = vpop.xlane.xlu0 %5377 }
 0x9ba   : > { %v5400_v3 = vsub.f32 %v8226_v60, %v5378_v51 }
 0x9bc   : > { %v5408_v62 = vmul.f32 1.442695, %v5400_v3 }
 0x9bd   : > { %v5381_v34 = vpop.xlane.xlu1 %5380 }
 0x9be   : > { %v5401_v6 = vsub.f32 %v4904_v33, %v5381_v34  ;;  %v3257_v33 = vadd.f32 %v8006_v46, %v8043_v11 }
 0x9c0   : > { %v5410_v21 = vmul.f32 1.442695, %v5401_v6 }
 0x9c1   : > { %v5384_v39 = vpop.xlane.xlu0 %5383 }
 0x9c2   : > { %7179 = vpow2.f32 %v5410_v21  ;;  %v5402_v46 = vsub.f32 %v8239_v42, %v5384_v39 }
 0x9c5   : > { %v5387_v29 = vpop.xlane.xlu0 %5386 }
 0x9c6   : > { %v5403_v47 = vsub.f32 %v5060_v58, %v5387_v29  ;;  %v3272_v58 = vadd.f32 %v8011_v37, %v8045_v15  ;;  %v3277_v37 = vadd.f32 %v8024_v50, %v8051_v22  ;;  %v5412_v15 = vmul.f32 1.442695, %v5402_v46 }
 0x9c8   : > { %v5414_v4 = vmul.f32 1.442695, %v5403_v47 }
 0x9c9   : > { %v5393_v8 = vpop.xlane.xlu0 %5392 }
 0x9ca   : > { %7181 = vpow2.f32 %v5414_v4  ;;  %v5405_v9 = vsub.f32 %v5216_v59, %v5393_v8  ;;  %v3282_v59 = vadd.f32 %v8020_v44, %v8049_v18  ;;  %v3287_v44 = vadd.f32 %v8032_v55, %v8055_v5 }
 0x9cc   : > { %v5418_v12 = vmul.f32 1.442695, %v5405_v9 }
 0x9cd   : > { %v5399_v14 = vpop.xlane.xlu0 %5398 }
 0x9ce   : > { %7183 = vpow2.f32 %v5418_v12  ;;  %v5407_v19 = vsub.f32 %v5372_v43, %v5399_v14 }
 0x9cf   : > { %v8246_v7 = vpop.eup %7179 }
 0x9d0   : > { %v5422_v20 = vmul.f32 1.442695, %v5407_v19  ;;  %v5427_v23 = vsel %vm1036_vm3, %v8246_v7, 0.0 }
 0x9d1   : > { %5428 = vadd.xlane.f32.xlu0 %v5427_v23 }
 0x9d2   : > { %7185 = vpow2.f32 %v5422_v20 }
 0x9d3   : > { %7187 = vpow2.f32 %v5408_v62 }
 0x9d4   : > { %7189 = vpow2.f32 %v5412_v15 }
 0x9d7   : > { %v8250_v28 = vpop.eup %7181 }
 0x9d8   : > { %v5433_v10 = vsel %vm1036_vm3, %v8250_v28, 0.0 }
 0x9d9   : > { %5434 = vadd.xlane.f32.xlu0 %v5433_v10 }
 0x9db   : > { %v8254_v31 = vpop.eup %7183 }
 0x9dc   : > { %v5439_v40 = vsel %vm1036_vm3, %v8254_v31, 0.0 }
 0x9dd   : > { %5440 = vadd.xlane.f32.xlu0 %v5439_v40 }
 0x9df   : > { %v8260_v63 = vpop.eup %7185  ;;  %v6918_v24 = vpop.f32.mrf.mxu1 }
 0x9e0   : > { %v8265_v27 = vadd.f32 %v6918_v24, %v3262_v16  ;;  %v5445_v48 = vsel %vm1036_vm3, %v8260_v63, 0.0  ;;  %v7188_v25 = vpop.eup %7187 }
 0x9e1   : > { %v4705_v56 = vpop.f32.mrf.mxu1  ;;  %5446 = vadd.xlane.f32.xlu0 %v5445_v48  ;;  %v5424_v55 = vsel %vm1036_vm3, %v7188_v25, 0.0  ;;  %v7190_v5 = vpop.eup %7189 }
 0x9e2   : > { %v8271_v53 = vadd.f32 %v4705_v56, %v3257_v33  ;;  %v5430_v39 = vsel %vm1036_vm3, %v7190_v5, 0.0 }
 0x9e3   : > { %v6921_v35 = vpop.f32.mrf.mxu1 }
 0x9e4   : > { %v8276_v11 = vadd.f32 %v6921_v35, %v3272_v58 }
 0x9e5   : > { %v4715_v60 = vpop.f32.mrf.mxu1 }
 0x9e6   : > { %v8280_v26 = vadd.f32 %v4715_v60, %v3267_v13 }
 0x9e7   : > { %v6924_v38 = vpop.f32.mrf.mxu1 }
 0x9e8   : > { %v8284_v43 = vadd.f32 %v6924_v38, %v3282_v59 }
 0x9e9   : > { %v4725_v52 = vpop.f32.mrf.mxu1 }
 0x9ea   : > { %v8288_v42 = vadd.f32 %v4725_v52, %v3277_v37 }
 0x9eb   : > { %v6927_v2 = vpop.f32.mrf.mxu1 }
 0x9ec   : > { %v8292_v18 = vadd.f32 %v6927_v2, %v3292_v17  ;;  %v418_v17 = vld [vmem:[%s8435_s3 + $0x38] sm:$0xff] }
 0x9ed   : > { %v4735_v30 = vpop.f32.mrf.mxu1 }
 0x9ee   : > { %v8294_v51 = vadd.f32 %v4735_v30, %v3287_v44 }
 0x9ef   : > { %v5138_v50 = vpop.f32.mrf.mxu1 }
 0x9f0   : > { %v5388_v22 = vsel %vm1036_vm3, %v5138_v50, -inf }
 0x9f1   : > { %v6952_v34 = vpop.f32.mrf.mxu1  ;;  %5389 = vmax.xlane.f32.xlu1 %v5388_v22 }
 0x9f3   : > { %v5294_v6 = vpop.f32.mrf.mxu1 }
 0x9f4   : > { %v5394_v54 = vsel %vm1036_vm3, %v5294_v6, -inf }
 0x9f5   : > { %v6962_v21 = vpop.f32.mrf.mxu1  ;;  %5395 = vmax.xlane.f32.xlu1 %v5394_v54 }
 0x9f7   : > { %5540 = vrot.lane.b32.xlu0 %v7589_v57, %s7315_s8 }
 0x9f9   : > { %5425 = vadd.xlane.f32.xlu1 %v5424_v55 }
 0x9fb   : > { %5768 = vrot.lane.b32.xlu0 %v7543_v41, %s7315_s8 }
 0x9fd   : > { %5431 = vadd.xlane.f32.xlu1 %v5430_v39 }
 0x9ff   : > { %5920 = vrot.lane.b32.xlu0 %v7559_v49, %s7315_s8 }
 0xa0e   : > { %5464 = vrot.lane.b32.xlu1 %v7618_v61, %s7315_s8 }
 0xa12   : > { %5616 = vrot.lane.b32.xlu1 %v7527_v32, %s7315_s8 }
 0xa16   : > { %5692 = vrot.lane.b32.xlu1 %v7534_v36, %s7315_s8 }
 0xa1a   : > { %5844 = vrot.lane.b32.xlu1 %v7552_v45, %s7315_s8 }
 0xa5a   : > { %v5429_v57 = vpop.xlane.xlu0 %5428 }
 0xa5b   : > { %7191 = vrcp.f32 %v5429_v57 }
 0xa62   : > { %v5435_v41 = vpop.xlane.xlu0 %5434 }
 0xa66   : > { %v5441_v29 = vpop.xlane.xlu0 %5440 }
 0xa68   : > { %v7192_v4 = vpop.eup %7191 }
 0xa69   : > { %v5451_v49 = vmul.f32 %v7192_v4, %v8246_v7 }
 0xa6a   : > { %v5447_v47 = vpop.xlane.xlu0 %5446 }
 0xa6e   : > { %v5541_v8 = vpop.permute.xlu0 %5540 }
 0xa6f   : > { %6974 = vmatpush3.msra.mxu0 %v5541_v8  ;;  %v6464_v8 = vld [vmem:[%s8436_s4] ss:$0 sm:$0xff] }
 0xa70   : > { %6976 = vmatmul.mubr.msk.f32.vlgmr.msra.gmra.mxu0 %vm1036_vm3, %v5451_v49  ;;  %6983 = vmatprep.subr.mxu0 %v7308_v0 }
 0xa71   : > { %6985 = vmatprep.mubr.msk.f32.mxu0 %vm7309_vm1, %v7308_v0 }
 0xa7a   : > { %v5390_v32 = vpop.xlane.xlu1 %5389 }
 0xa7b   : > { %v5404_v36 = vsub.f32 %v5138_v50, %v5390_v32 }
 0xa7d   : > { %v5416_v45 = vmul.f32 1.442695, %v5404_v36 }
 0xa7e   : > { %v5396_v61 = vpop.xlane.xlu1 %5395 }
 0xa7f   : > { %7193 = vpow2.f32 %v5416_v45  ;;  %v5406_v9 = vsub.f32 %v5294_v6, %v5396_v61 }
 0xa80   : > { %7195 = vrcp.f32 %v5435_v41 }
 0xa81   : > { %v5420_v12 = vmul.f32 1.442695, %v5406_v9 }
 0xa82   : > { %v5426_v14 = vpop.xlane.xlu1 %5425 }
 0xa83   : > { %7197 = vpow2.f32 %v5420_v12 }
 0xa84   : > { %7199 = vrcp.f32 %v5426_v14 }
 0xa85   : > { %7201 = vrcp.f32 %v5441_v29 }
 0xa86   : > { %v5432_v19 = vpop.xlane.xlu1 %5431 }
 0xa87   : > { %7203 = vrcp.f32 %v5432_v19 }
 0xa88   : > { %7205 = vrcp.f32 %v5447_v47 }
 0xa8a   : > { %v5465_v7 = vpop.permute.xlu1 %5464 }
 0xa8b   : > { %6969 = vmatpush3.msra.mxu1 %v5465_v7 }
 0xa8c   : > { %v7194_v20 = vpop.eup %7193  ;;  %6978 = vmatprep.subr.mxu1 %v7308_v0 }
 0xa8d   : > { %v5436_v23 = vsel %vm1036_vm3, %v7194_v20, 0.0  ;;  %v7196_v40 = vpop.eup %7195 }
 0xa8e   : > { %5437 = vadd.xlane.f32.xlu1 %v5436_v23  ;;  %v5617_v10 = vpop.permute.xlu1 %5616  ;;  %v5455_v56 = vmul.f32 %v7196_v40, %v8250_v28  ;;  %v5769_v28 = vpop.permute.xlu0 %5768 }
 0xa90   : > { %v7198_v16 = vpop.eup %7197 }
 0xa91   : > { %v7200_v24 = vpop.eup %7199  ;;  %v5442_v33 = vsel %vm1036_vm3, %v7198_v16, 0.0 }
 0xa92   : > { %5443 = vadd.xlane.f32.xlu1 %v5442_v33  ;;  %v5693_v3 = vpop.permute.xlu1 %5692  ;;  %v5449_v48 = vmul.f32 %v7200_v24, %v7188_v25  ;;  %v7202_v58 = vpop.eup %7201 }
 0xa93   : > { %6984 = vmatpush3.msra.mxu0 %v5693_v3  ;;  %v5459_v46 = vmul.f32 %v7202_v58, %v8254_v31  ;;  %v5921_v2 = vpop.permute.xlu0 %5920 }
 0xa94   : > { %v7204_v35 = vpop.eup %7203  ;;  %6971 = vmatmul.mubr.msk.f32.vlgmr.msra.gmra.mxu1 %vm1036_vm3, %v5449_v48  ;;  %6986 = vmatmul.mubr.msk.f32.vlgmr.msra.gmra.mxu0 %vm1036_vm3, %v5455_v56 }
 0xa95   : > { %6979 = vmatpush3.msra.mxu1 %v5617_v10  ;;  %6980 = vmatprep.mubr.msk.f32.mxu1 %vm7309_vm1, %v7308_v0  ;;  %v5453_v13 = vmul.f32 %v7204_v35, %v7190_v5  ;;  %v7206_v59 = vpop.eup %7205 }
 0xa96   : > { %6988 = vmatprep.subr.mxu1 %v7308_v0  ;;  %6993 = vmatprep.subr.mxu0 %v7308_v0  ;;  %v5845_v62 = vpop.permute.xlu1 %5844  ;;  %v5463_v37 = vmul.f32 %v7206_v59, %v8260_v63  ;;  %v417_v63 = vld [vmem:[%s8435_s3 + $0x30] sm:$0xff] }
 0xa97   : > { %6994 = vmatpush3.msra.mxu0 %v5845_v62  ;;  %6995 = vmatprep.mubr.msk.f32.mxu0 %vm7309_vm1, %v7308_v0 }
 0xa98   : > { %6981 = vmatmul.mubr.msk.f32.vlgmr.msra.gmra.mxu1 %vm1036_vm3, %v5453_v13  ;;  %6996 = vmatmul.mubr.msk.f32.vlgmr.msra.gmra.mxu0 %vm1036_vm3, %v5459_v46 }
 0xa99   : > { %6989 = vmatpush3.msra.mxu1 %v5769_v28  ;;  %7003 = vmatprep.subr.mxu0 %v7308_v0 }
 0xa9a   : > { %7005 = vmatprep.mubr.msk.f32.mxu0 %vm7309_vm1, %v7308_v0  ;;  %6990 = vmatprep.mubr.msk.f32.mxu1 %vm7309_vm1, %v7308_v0 }
 0xa9b   : > { %6998 = vmatprep.subr.mxu1 %v7308_v0 }
 0xaa3   : > { %5996 = vrot.lane.b32.xlu1 %v7741_v1, %s7315_s8 }
 0xb17   : > { %v5438_v31 = vpop.xlane.xlu1 %5437 }
 0xb18   : > { %7207 = vrcp.f32 %v5438_v31 }
 0xb1b   : > { %v5444_v60 = vpop.xlane.xlu1 %5443 }
 0xb1c   : > { %7209 = vrcp.f32 %v5444_v60 }
 0xb1f   : > { %v5997_v38 = vpop.permute.xlu1 %5996 }
 0xb20   : > { %7004 = vmatpush3.msra.mxu0 %v5997_v38 }
 0xb21   : > { %7006 = vmatmul.mubr.msk.f32.vlgmr.msra.gmra.mxu0 %vm1036_vm3, %v5463_v37 }
 0xb25   : > { %v7208_v15 = vpop.eup %7207 }
 0xb26   : > { %v5457_v52 = vmul.f32 %v7208_v15, %v7194_v20 }
 0xb28   : > { %6991 = vmatmul.mubr.msk.f32.vlgmr.msra.gmra.mxu1 %vm1036_vm3, %v5457_v52 }
 0xb29   : > { %v7210_v1 = vpop.eup %7209  ;;  %6999 = vmatpush3.msra.mxu1 %v5921_v2  ;;  %7000 = vmatprep.mubr.msk.f32.mxu1 %vm7309_vm1, %v7308_v0 }
 0xb2a   : > { %v5461_v44 = vmul.f32 %v7210_v1, %v7198_v16  ;;  %7008 = vmatprep.subr.mxu1 %v418_v17 }
 0xb2c   : > { %7001 = vmatmul.mubr.msk.f32.vlgmr.msra.gmra.mxu1 %vm1036_vm3, %v5461_v44 }
 0xb2d   : > { %7009 = vmatpush3.msra.mxu1 %v418_v17 }
 0xb2e   : > { %7010 = vmatprep.subr.mxu1 %v417_v63 }
 0xb2f   : > { %7011 = vmatpush3.msra.mxu1 %v417_v63 }
 0xb30   : > { %v5612_v30 = vpop.f32.mrf.mxu0 }
 0xb32   : > { %v6977_v50 = vpop.f32.mrf.mxu0 }
 0xb54   : > { %v5536_v22 = vpop.f32.mrf.mxu1  ;;  %v5764_v34 = vpop.f32.mrf.mxu0 }
 0xb55   : > { %7012 = vmatprep.mubr.msk.f32.mxu1 %vm422_vm2, %v5536_v22 }
 0xb56   : > { %v6972_v6 = vpop.f32.mrf.mxu1  ;;  %7013 = vmatmul.mubr.msk.f32.vlgmr.msra.gmra.mxu1 %vm422_vm2, %v5612_v30  ;;  %v6987_v0 = vpop.f32.mrf.mxu0 }
 0xb58   : > { %v5688_v54 = vpop.f32.mrf.mxu1  ;;  %v5916_v25 = vpop.f32.mrf.mxu0 }
 0xb59   : > { %7015 = vmatprep.mubr.msk.f32.mxu1 %vm422_vm2, %v5688_v54 }
 0xb5a   : > { %v6982_v21 = vpop.f32.mrf.mxu1  ;;  %7016 = vmatmul.mubr.msk.f32.gmra.mxu1 %vm422_vm2, %v5764_v34  ;;  %v6997_v55 = vpop.f32.mrf.mxu0 }
 0xbe1   : > { %v6068_v5 = vpop.f32.mrf.mxu0 }
 0xbe3   : > { %v7007_v39 = vpop.f32.mrf.mxu0 }
 0xbe8   : > { %v5840_v57 = vpop.f32.mrf.mxu1 }
 0xbe9   : > { %7018 = vmatprep.mubr.msk.f32.mxu1 %vm422_vm2, %v5840_v57 }
 0xbea   : > { %v6992_v41 = vpop.f32.mrf.mxu1  ;;  %7019 = vmatmul.mubr.msk.f32.gmra.mxu1 %vm422_vm2, %v5916_v25 }
 0xbec   : > { %v5992_v29 = vpop.f32.mrf.mxu1 }
 0xbed   : > { %7021 = vmatprep.mubr.msk.f32.mxu1 %vm422_vm2, %v5992_v29 }
 0xbee   : > { %v7002_v47 = vpop.f32.mrf.mxu1  ;;  %7022 = vmatmul.mubr.msk.f32.gmra.mxu1 %vm422_vm2, %v6068_v5 }
 0xc16   : > { %v7014_v4 = vpop.f32.mrf.mxu1 }
 0xc17   : > { %v6202_v49 = vadd.f32 %v7014_v4, %v8265_v27 }
 0xc18   : > { %v6162_v32 = vpop.f32.mrf.mxu1 }
 0xc19   : > { %v6217_v36 = vadd.f32 %v6464_v8, %v6202_v49  ;;  %v6201_v45 = vadd.f32 %v6162_v32, %v8271_v53 }
 0xc1a   : > { %v7017_v61 = vpop.f32.mrf.mxu1 }
 0xc1b   : > { %6225 = vst.msk [vmem:[%s242_s15 + $0x8] sm:$0xff] %vm422_vm2, %v6217_v36  ;;  %v6216_v9 = vadd.f32 %v6464_v8, %v6201_v45  ;;  %v6204_v12 = vadd.f32 %v7017_v61, %v8276_v11 }
 0xc1c   : > { %v6172_v14 = vpop.f32.mrf.mxu1 }
 0xc1d   : > { %6224 = vst.msk [vmem:[%s242_s15] sm:$0xff] %vm422_vm2, %v6216_v9  ;;  %v6219_v19 = vadd.f32 %v6464_v8, %v6204_v12  ;;  %v6203_v7 = vadd.f32 %v6172_v14, %v8280_v26 }
 0xc1f   : > { %6227 = vst.msk [vmem:[%s242_s15 + $0x18] sm:$0xff] %vm422_vm2, %v6219_v19  ;;  %v6218_v27 = vadd.f32 %v6464_v8, %v6203_v7 }
 0xc21   : > { %6226 = vst.msk [vmem:[%s242_s15 + $0x10] sm:$0xff] %vm422_vm2, %v6218_v27 }
 0xcaa   : > { %v7020_v53 = vpop.f32.mrf.mxu1 }
 0xcab   : > { %v6206_v20 = vadd.f32 %v7020_v53, %v8284_v43 }
 0xcac   : > { %v6182_v23 = vpop.f32.mrf.mxu1 }
 0xcad   : > { %v6221_v10 = vadd.f32 %v6464_v8, %v6206_v20  ;;  %v6205_v40 = vadd.f32 %v6182_v23, %v8288_v42 }
 0xcae   : > { %v7023_v11 = vpop.f32.mrf.mxu1 }
 0xcaf   : > { %6229 = vst.msk [vmem:[%s242_s15 + $0x28] sm:$0xff] %vm422_vm2, %v6221_v10  ;;  %v6220_v16 = vadd.f32 %v6464_v8, %v6205_v40  ;;  %v6208_v26 = vadd.f32 %v7023_v11, %v8292_v18 }
 0xcb0   : > { %v6192_v24 = vpop.f32.mrf.mxu1 }
 0xcb1   : > { %6228 = vst.msk [vmem:[%s242_s15 + $0x20] sm:$0xff] %vm422_vm2, %v6220_v16  ;;  %v6223_v33 = vadd.f32 %v6464_v8, %v6208_v26  ;;  %v6207_v43 = vadd.f32 %v6192_v24, %v8294_v51 }
 0xcb3   : > { %6231 = vst.msk [vmem:[%s242_s15 + $0x38] sm:$0xff] %vm422_vm2, %v6223_v33  ;;  %v6222_v42 = vadd.f32 %v6464_v8, %v6207_v43 }
 0xcb5   : > { %6230 = vst.msk [vmem:[%s242_s15 + $0x30] sm:$0xff] %vm422_vm2, %v6222_v42 }
 0xcb6   : > { %7252 = shalt.err (!%p7249_p10)
}
 0xcb7   : > { %s7253_s13 = scalar_lea.hbm %s8385_s7, 1024  ;;  %s7257_s12 = scalar_lea.hbm %s8437_s5, 2048 }
 0xcb8   : > { %p7254_p0 = scmp.ne.s32.totalorder %s8385_s7, %s7253_s13  ;;  %p7258_p1 = scmp.lt.s32.totalorder %s8385_s7, %s8437_s5 }
 0xcb9   : > { %p7259_p3 = scmp.lt.s32.totalorder %s7257_s12, %s7253_s13 }
 0xcba   : > { %p7255_p2 = pnand %p7254_p0, %p8446_p12 }
 0xcbb   : > { %p7260_p6 = por %p7259_p3, %p7258_p1 }
 0xcbc   : > { %p7256_p9 = pneg %p7255_p2 }
 0xcbe   : > { %p7261_p11 = pnand %p7260_p6, %p7256_p9 }
 0xcc0   : > { %7264 = shalt.err (!%p7261_p11)
}
 0xcc1   : > { %s7318_s25 = smov 128   ;;  %s7319_s8 = smov 8  }
 0xcc2   : > { %7026 = dma.vmem_to_hbm [thread:$0]  (%p8446_p12), %s8387_s16, 1024, %s8385_s7, %s6233_s22, %s7318_s25, %s7318_s25, %s7319_s8  }
 0xcc3 PF: > { %s6261_s28 = sand.u32 1, %s7291_s18   ;;  %p8447_p13 = scmp.ne.s32.totalorder %s8443_s6, 0 }
 0xcc4   : > { %p8448_p4 = scmp.ge.s32.totalorder %s7303_s21, 2  ;;  %s6262_s29 = scalar_lea.sflag [#allocation4], %s6261_s28 }
 0xcc6   : > { %p7033_p5 = pnand %p8448_p4, %p8447_p13 }
 0xcc8   : > { %p7034_p7 = pneg %p7033_p5 }
 0xcca   : > { %7286 = dma.done.wait (%p7034_p7), %s6262_s29, 1024  }
 0xccb   : > { %7288 = vsyncadd (%p7034_p7), %s6262_s29, 4294966272  ;;  %p18_p8 = scmp.ge.s32.totalorder %s7375_s24, 4   ;;  %s8449_s18 = smov %s7295_s19 }
 0xccc   : > { %s8450_s19 = smov %s7299_s20  ;;  %s8451_s20 = smov %s7387_s27 }
 0xccd   : > { %s8452_s21 = smov %s7375_s24  ;;  %20 = sbr.rel (!%p18_p8) target bundleno = 5 (0x5), region = 85 }
 0xcd2   :  { %6267 = vsyncpa [#allocation3], 1 }
 0xcd3   :  { %6269 = vsyncpa [#allocation3 + $0x1], 1 }
 0xcd4   :  { %6270 = vsyncpa [#allocation4], 1 }
 0xcd5   :  { %6272 = vsyncpa [#allocation4 + $0x1], 1 }

</bundles_post_ra>
